<compile_context>
chip_gen: v7x
topology: tpu7x:2x2x1
jax: 0.10.0
libtpu: 0.0.40
codegen_flags: <defaults>
</compile_context>

<pallas_src>
import functools

import jax
import jax.numpy as jnp
from jax import lax
from jax.experimental import pallas as pl
from jax.experimental.pallas import tpu as pltpu

EPS = 1e-5
COMPUTE_DTYPE = jnp.bfloat16     # MXU / streaming dtype; all epilogues stay f32 (v5e-safe)

try:
    _VMEM_CAP_BYTES = int(pltpu.get_tpu_info().vmem_capacity_bytes)
except Exception:                 # conservative fallback = v7x per-TensorCore VMEM
    _VMEM_CAP_BYTES = 64 * 1024 * 1024


def _round_up(n, m):
    return ((n + m - 1) // m) * m


# ----------------------------------------------------------------------------
# Fused decoder-block kernel
# ----------------------------------------------------------------------------
def _decoder_block_kernel(*refs, n_res, apply_completion, pad_h):
    f32 = jnp.float32
    bf16 = jnp.bfloat16

    if apply_completion:
        (x_ref, keep_ref, coords_ref, sc_ref,
         up_w, up_b, rs_w, rs_wc, rs_b,
         res_w1, res_b1, res_w2, res_b2, geo_h,
         head_w, head_b, sel0, child_or, geo_l,
         h_out, lg_out) = refs
    else:
        (x_ref, keep_ref, coords_ref, sc_ref,
         up_w, up_b, rs_w, rs_wc, rs_b,
         res_w1, res_b1, res_w2, res_b2, geo_h,
         h_out) = refs

    def mm(a, w):  # bf16 MXU matmul with f32 accumulation
        return jnp.dot(a.astype(w.dtype), w, preferred_element_type=f32)

    # upsample: generative deconv ks=2 stride=2 (bias=False) + folded BN + ReLU.
    # All 8 children of a voxel are produced lane-packed: (tm, 8*cout).
    y = jnp.maximum(mm(x_ref[...], up_w[...]) + up_b[...], 0.0)

    # resize: BN(cout+3) folded into the 1x1x1 conv, weight split into feature / coordinate
    # parts (no (cout+3)-wide concat is ever materialized); block-diagonal per child.
    dec = mm(y, rs_w[...]) + mm(coords_ref[...], rs_wc[...]) + rs_b[...]

    # + encoder shortcut (sparse add analog: rows/lanes coordinate-aligned, streamed bf16)
    dec = dec + sc_ref[...].astype(f32)

    # process: residual blocks (drop_path = 0), block-diagonal per child.
    # TODO(synk): true 3x3x3 sparse neighborhood gather has no clean Pallas equivalent here;
    #             a pointwise (1x1x1) conv analog is used for the residual-block convs.
    # TODO(synk): at production widths (8*cout > one MXU tile: 256 on v6e/v7x, 128 on v5e)
    #             the block-diagonal matmuls should be split into MXU-tile-aligned per-child
    #             chunks to skip the all-zero off-diagonal tiles; current config fits one tile.
    def res_step(r, d):
        t = jnp.maximum(mm(d, res_w1[r]) + res_b1[r], 0.0)     # conv1 + BN1 + ReLU
        t = mm(t, res_w2[r]) + res_b2[r]                        # conv2 + BN2
        return jnp.maximum(d + t, 0.0)                          # skip + ReLU

    if n_res <= 4:
        for r in range(n_res):
            dec = res_step(r, dec)
    else:
        # heavy_decoder: bound live ranges (avoid vreg spills) while keeping LLO visibility
        dec = lax.fori_loop(0, n_res, res_step, dec, unroll=True)

    # pruning masks (MinkowskiPruning analog): keep_ref already carries the geometric-bounds
    # keep AND the previous block's (geo ∧ completion) keep — exact 0/1 values in bf16.
    keep_child = keep_ref[...].astype(f32)                      # (tm, 8)

    if apply_completion:
        # completion heads: all n_infers heads merged (classes padded to a 128-lane multiple
        # with zero weights / -1e4 bias so they never win argmax).
        logits = mm(dec, head_w[...]) + head_b[...]             # (tm, 8*nhnc_pad) f32
        # predict_completion_sem_logit (simple/test path):
        #   keep(child) = OR over heads of (argmax(sem_logits) != 0)
        #               = exists class c>0 with logit_c > logit_0 (softmax is argmax-invariant)
        lb = logits.astype(bf16)
        cls0 = jnp.dot(lb, sel0[...], preferred_element_type=f32)   # class-0 logit / segment
        ind = (lb.astype(f32) > cls0).astype(bf16)                  # consistent-dtype compare
        comp = jnp.dot(ind, child_or[...], preferred_element_type=f32) > 0.0
        keep_child = keep_child * comp.astype(f32)

    kc = keep_child.astype(bf16)
    h_mask = jnp.dot(kc, geo_h[...], preferred_element_type=f32)
    h = dec * h_mask

    if apply_completion:
        lg_mask = jnp.dot(kc, geo_l[...], preferred_element_type=f32)
        lg_out[...] = (logits * lg_mask).astype(lg_out.dtype)

    if pad_h:  # pad to a 128-lane multiple -> single unmasked full-width store
        h = jnp.concatenate([h, jnp.zeros((h.shape[0], pad_h), f32)], axis=1)
    h_out[...] = h.astype(h_out.dtype)


def _full_spec(a):
    # resident weights (constant index_map).
    # TODO(synk): on v7x, pipeline_mode=pl.Buffered(1) would halve the resident-weight VMEM
    #             footprint; left at the default pipelining for portability.
    nd = a.ndim
    return pl.BlockSpec(a.shape, lambda i, nd=nd: (0,) * nd)


def _row_spec(tm, c):
    return pl.BlockSpec((tm, c), lambda i: (i, 0))


# ----------------------------------------------------------------------------
# DecoderBlock forward (dense analog): one fused pallas_call per block
# ----------------------------------------------------------------------------
def decoder_block_forward(p, x_F, x_C, stride, shortcut_F, gmin, gmax, parent_keep, *,
                          apply_completion, tile_m=512):
    N = x_F.shape[0]
    cin, cout = p["cin"], p["cout"]
    n_infers, n_classes = p["n_infers"], p["n_classes"]
    ncp = p["n_classes_pad"]
    nhnc_pad = n_infers * ncp
    new_stride = stride // 2

    # --- child coordinates / geometric keep / normalized coords (tiny host-side int math) ---
    offsets = jnp.array([[0, 0, 0], [0, 0, 1], [0, 1, 0], [0, 1, 1],
                         [1, 0, 0], [1, 0, 1], [1, 1, 0], [1, 1, 1]], jnp.int32) * new_stride
    xyz = x_C[:, 1:]
    new_xyz = xyz[:, None, :] + offsets[None, :, :]                          # (N, 8, 3)
    keep8 = jnp.all((new_xyz >= gmin[None, None, :]) &
                    (new_xyz <= gmax[None, None, :]), axis=-1).astype(jnp.float32)  # (N, 8)
    if parent_keep is not None:
        keep8 = keep8 * parent_keep[:, None]      # propagate pruning of parent voxels
    coords24 = (new_xyz.astype(jnp.float32) / jnp.float32(new_stride)).reshape(N, 24)
    batch = jnp.broadcast_to(x_C[:, None, :1], (N, 8, 1))
    new_C = jnp.concatenate([batch, new_xyz], axis=-1).reshape(N * 8, 4)     # child-interleaved

    # shortcut in child-interleaved packed layout (row p, lanes [j*cout,(j+1)*cout) = child j)
    shortcut_packed = shortcut_F.reshape(N, 8 * cout)

    # --- row tiling: multiple of 8; guarantee >= 2 grid steps so v7x shards across both TCs ---
    Np8 = _round_up(max(N, 8), 8)
    tm = min(tile_m, Np8)
    if Np8 // tm < 2 and Np8 >= 16:
        tm = _round_up(pl.cdiv(Np8, 2), 8)
    Np = _round_up(N, tm)
    pad = Np - N

    # bf16 streaming of the large row tiles (matmul LHS / 0-1 masks only; epilogues stay f32)
    x_p = x_F.astype(COMPUTE_DTYPE)
    keep_p = keep8.astype(COMPUTE_DTYPE)
    coords_p = coords24
    sc_p = shortcut_packed.astype(COMPUTE_DTYPE)
    if pad:
        x_p = jnp.pad(x_p, ((0, pad), (0, 0)))
        keep_p = jnp.pad(keep_p, ((0, pad), (0, 0)))
        coords_p = jnp.pad(coords_p, ((0, pad), (0, 0)))
        sc_p = jnp.pad(sc_p, ((0, pad), (0, 0)))

    weights = [p["up_w"], p["up_b"], p["rs_w"], p["rs_wc"], p["rs_b"],
               p["res_w1"], p["res_b1"], p["res_w2"], p["res_b2"], p["geo_h"]]
    if apply_completion:
        weights += [p["head_w"], p["head_b"], p["sel0"], p["child_or"], p["geo_l"]]

    h_lanes = _round_up(8 * cout, 128)            # lane-dense output (unmasked 128-wide stores)
    pad_h = h_lanes - 8 * cout

    out_shape = [jax.ShapeDtypeStruct((Np, h_lanes), COMPUTE_DTYPE)]
    out_specs = [_row_spec(tm, h_lanes)]
    if apply_completion:
        out_shape.append(jax.ShapeDtypeStruct((Np, 8 * nhnc_pad), jnp.float32))
        out_specs.append(_row_spec(tm, 8 * nhnc_pad))

    # re-derive the VMEM budget per block (resident weights + double-buffered row tiles)
    weight_bytes = sum(int(w.size) * w.dtype.itemsize for w in weights)
    tile_bytes = tm * (2 * cin + 2 * 8 + 4 * 24 + 2 * 8 * cout + 2 * h_lanes
                       + (4 * 8 * nhnc_pad if apply_completion else 0))
    scratch_bytes = 8 * tm * 8 * cout * 4
    need = 2 * weight_bytes + 2 * tile_bytes + scratch_bytes + (8 << 20)
    vmem_limit = int(min(max(need, 32 << 20), int(0.85 * _VMEM_CAP_BYTES)))

    kernel = functools.partial(_decoder_block_kernel, n_res=p["n_res"],
                               apply_completion=apply_completion, pad_h=pad_h)

    outs = pl.pallas_call(
        kernel,
        out_shape=tuple(out_shape),
        grid=(Np // tm,),
        in_specs=[_row_spec(tm, cin), _row_spec(tm, 8), _row_spec(tm, 24),
                  _row_spec(tm, 8 * cout)] + [_full_spec(w) for w in weights],
        out_specs=tuple(out_specs),
        compiler_params=pltpu.CompilerParams(
            dimension_semantics=("parallel",),
            vmem_limit_bytes=vmem_limit),
    )(x_p, keep_p, coords_p, sc_p, *weights)

    # unpack lane-dense outputs to per-voxel rows (contiguous reshape, child-interleaved order)
    h = outs[0][:N, :8 * cout].reshape(N * 8, cout)     # bf16: next block's matmul LHS

    keep_flat = keep8.reshape(N * 8)
    if apply_completion:
        lg = outs[1][:N].reshape(N * 8, nhnc_pad)
        sem_logits = [lg[:, k * ncp:k * ncp + n_classes] for k in range(n_infers)]
        # combined (geo ∧ parent ∧ completion) child keep, carried into the next block.
        # Same rule + dtype as in-kernel (bf16 compare) so masks stay consistent.
        lgb = lg.astype(COMPUTE_DTYPE)
        comp = jnp.zeros((N * 8,), bool)
        for k in range(n_infers):
            seg = lgb[:, k * ncp:k * ncp + n_classes]
            comp = comp | jnp.any(seg[:, 1:] > seg[:, :1], axis=1)
        child_keep = keep_flat * comp.astype(jnp.float32)
    else:
        sem_logits = None
        child_keep = keep_flat

    return h, new_C, new_stride, sem_logits, child_keep


# ----------------------------------------------------------------------------
# Parameter construction (deterministic) and BN folding (eval-mode semantics)
# ----------------------------------------------------------------------------
def bn_params(key, c):
    k1, k2, k3, k4 = jax.random.split(key, 4)
    gamma = 1.0 + 0.1 * jax.random.normal(k1, (c,), jnp.float32)
    beta = 0.1 * jax.random.normal(k2, (c,), jnp.float32)
    mean = 0.1 * jax.random.normal(k3, (c,), jnp.float32)
    var = 1.0 + 0.1 * jax.random.uniform(k4, (c,), jnp.float32)
    return gamma, beta, mean, var


def bn_scale_shift(bn, eps=EPS):
    gamma, beta, mean, var = bn
    s = gamma / jnp.sqrt(var + eps)
    t = beta - mean * s
    return s, t


def fold_bn_after(w, b, bn):
    # y = BN(x @ w + b)  ->  x @ (w * s) + (b * s + t)
    s, t = bn_scale_shift(bn)
    return w * s[None, :], b * s + t


def fold_bn_before(w, b, bn):
    # y = BN(x) @ w + b  ->  x @ (s * w) + (t @ w + b)
    s, t = bn_scale_shift(bn)
    return s[:, None] * w, t @ w + b


def init_params(key, f, n_classes, n_infers, heavy_decoder=False):
    dec_ch = f[::-1]
    n_res = 7 if heavy_decoder else 3

    # pad classes so the logits output is a multiple of 128 lanes (unmasked stores)
    ncp = n_classes
    while (8 * n_infers * ncp) % 128 != 0:
        ncp += 1
    nhnc_pad = n_infers * ncp

    blocks = []
    block_keys = jax.random.split(key, len(dec_ch) - 1)
    eye8 = jnp.eye(8, dtype=jnp.float32)
    cdt = COMPUTE_DTYPE
    for i in range(len(dec_ch) - 1):
        cin, cout = dec_ch[i], dec_ch[i + 1]
        k = jax.random.split(block_keys[i], 8 + 4 * n_res + 2 * n_infers)
        ki = iter(range(len(k)))

        # upsample: generative deconv ks=2 stride=2 (bias=False) + BN(cout) + ReLU, BN folded.
        # TODO(synk): BasicGenerativeDeconvolutionBlock internals unavailable; assumed deconv+BN+ReLU.
        w_up = 0.1 * jax.random.normal(k[next(ki)], (cin, 8, cout), jnp.float32)
        s_up, t_up = bn_scale_shift(bn_params(k[next(ki)], cout))
        up_w = (w_up * s_up[None, None, :]).reshape(cin, 8 * cout)
        up_b = jnp.tile(t_up, 8).reshape(1, 8 * cout)

        # resize: BN(cout+3) then 1x1x1 conv (cout+3 -> cout, bias=True); BN folded, weight
        # split into feature / coordinate parts, then block-diagonalised per child.
        w_rs = 0.1 * jax.random.normal(k[next(ki)], (cout + 3, cout), jnp.float32)
        b_rs = 0.1 * jax.random.normal(k[next(ki)], (cout,), jnp.float32)
        w_rs, b_rs = fold_bn_before(w_rs, b_rs, bn_params(k[next(ki)], cout + 3))
        rs_w = jnp.kron(eye8, w_rs[:cout])                  # (8cout, 8cout)
        rs_wc = jnp.kron(eye8, w_rs[cout:])                 # (24,    8cout)
        rs_b = jnp.tile(b_rs, 8).reshape(1, 8 * cout)

        # residual blocks (pointwise analog), folded BN, stacked + block-diagonalised
        rw1, rb1, rw2, rb2 = [], [], [], []
        for _ in range(n_res):
            w1 = 0.1 * jax.random.normal(k[next(ki)], (cout, cout), jnp.float32)
            w1, b1 = fold_bn_after(w1, jnp.zeros((cout,), jnp.float32),
                                   bn_params(k[next(ki)], cout))
            w2 = 0.1 * jax.random.normal(k[next(ki)], (cout, cout), jnp.float32)
            w2, b2 = fold_bn_after(w2, jnp.zeros((cout,), jnp.float32),
                                   bn_params(k[next(ki)], cout))
            rw1.append(jnp.kron(eye8, w1)); rb1.append(jnp.tile(b1, 8))
            rw2.append(jnp.kron(eye8, w2)); rb2.append(jnp.tile(b2, 8))
        res_w1 = jnp.stack(rw1); res_b1 = jnp.stack(rb1)[:, None, :]
        res_w2 = jnp.stack(rw2); res_b2 = jnp.stack(rb2)[:, None, :]

        # completion heads: n_infers x (1x1x1 conv cout -> n_classes, bias=True); classes
        # padded to ncp with zero weights / -1e4 bias (never win argmax), merged + block-diag.
        hws, hbs = [], []
        for _ in range(n_infers):
            hw = 0.1 * jax.random.normal(k[next(ki)], (cout, n_classes), jnp.float32)
            hb = 0.1 * jax.random.normal(k[next(ki)], (n_classes,), jnp.float32)
            hws.append(jnp.zeros((cout, ncp), jnp.float32).at[:, :n_classes].set(hw))
            hbs.append(jnp.full((ncp,), -1e4, jnp.float32).at[:n_classes].set(hb))
        hw_all = jnp.concatenate(hws, axis=1)               # (cout, nhnc_pad)
        hb_all = jnp.concatenate(hbs)                       # (nhnc_pad,)
        head_w = jnp.kron(eye8, hw_all)                     # (8cout, 8*nhnc_pad)
        head_b = jnp.tile(hb_all, 8).reshape(1, 8 * nhnc_pad)

        # constant 0/1 selector matrices for in-kernel mask epilogues (exact in bf16)
        geo_h = jnp.kron(eye8, jnp.ones((1, cout), jnp.float32))        # (8, 8cout)
        geo_l = jnp.kron(eye8, jnp.ones((1, nhnc_pad), jnp.float32))    # (8, 8nhnc_pad)
        e0 = jnp.zeros((ncp, ncp), jnp.float32).at[0].set(1.0)
        sel0 = jnp.kron(jnp.eye(8 * n_infers, dtype=jnp.float32), e0)   # class-0 per segment
        child_or = jnp.kron(eye8, jnp.ones((nhnc_pad, 1), jnp.float32))  # lanes -> child OR

        blocks.append(dict(
            cin=cin, cout=cout, n_res=n_res, n_infers=n_infers,
            n_classes=n_classes, n_classes_pad=ncp,
            up_w=up_w.astype(cdt), up_b=up_b,
            rs_w=rs_w.astype(cdt), rs_wc=rs_wc.astype(cdt), rs_b=rs_b,
            res_w1=res_w1.astype(cdt), res_b1=res_b1,
            res_w2=res_w2.astype(cdt), res_b2=res_b2,
            head_w=head_w.astype(cdt), head_b=head_b,
            geo_h=geo_h.astype(cdt), geo_l=geo_l.astype(cdt),
            sel0=sel0.astype(cdt), child_or=child_or.astype(cdt)))
    return blocks


# ----------------------------------------------------------------------------
# DecoderGenerativeSepConvV2 forward (dense analog)
# ----------------------------------------------------------------------------
def decoder_forward(params, x_F, x_C, stride0, features, pixel_coordinates,
                    global_min_coords, global_max_coords, *, tile_m=512):
    # pixel_coordinates = (pixel_coordinates + 1) / 2  (unused downstream in this module)
    # TODO(synk): reference casts to float64; float32 kept (x64 disabled by default on TPU).
    pixel_coordinates = (pixel_coordinates + 1.0) / 2.0

    features = features[::-1]
    sem_logits_at_scales = {}
    xs = {}
    scene_size_at_scales = {}

    stride = stride0
    parent_keep = None
    n_blocks = len(params)
    for i, p in enumerate(params):
        scale = 2 ** (n_blocks - 1 - i)
        apply_completion = scale in (4, 2, 1)
        # TODO(synk): MinkowskiPruning drops rows (dynamic shapes); emulated with in-kernel
        #             zero-masking; the combined keep is propagated (ANDed) into the next block.
        # TODO(synk): occ_thres top-k / multinomial re-sampling paths not implemented.
        x_F, x_C, stride, sem_logits, parent_keep = decoder_block_forward(
            p, x_F, x_C, stride, features[i], global_min_coords, global_max_coords,
            parent_keep, apply_completion=apply_completion, tile_m=tile_m)

        if apply_completion:
            scene_size = (global_max_coords - global_min_coords + 1).astype(jnp.float32)
            xs[scale] = (x_F, x_C)
            sem_logits_at_scales[scale] = sem_logits
            scene_size_at_scales[scale] = (scene_size / scale).astype(jnp.int32)

    ret = {"sem_logits_at_scales": sem_logits_at_scales,
           "xs": {s: v[0] for s, v in xs.items()},
           "scene_size_at_scales": scene_size_at_scales}
    # TODO(synk): predict_panop / transformer_predictor / deformable_cross_attn are external
    #             injected modules (not defined in this file) and are not reproduced.
    return ret


# ----------------------------------------------------------------------------
if __name__ == "__main__":
    key = jax.random.PRNGKey(0)
    k_param, kx, kc, kf1, kf2, kf3, kp = jax.random.split(key, 7)

    # Small config: f (encoder channels) -> dec_ch = f[::-1] = [64, 32, 16, 8]
    f = [8, 16, 32, 64]
    n_classes = 4
    n_infers = 2
    params = init_params(k_param, f, n_classes, n_infers, heavy_decoder=False)

    N0 = 16          # number of active voxels at the coarsest scale
    C0 = f[-1]       # 64 input channels
    stride0 = 8      # tensor_stride of the coarsest sparse tensor

    x_F = jax.random.normal(kx, (N0, C0), jnp.float32)
    xyz0 = (jax.random.randint(kc, (N0, 3), 0, 4) * stride0).astype(jnp.int32)
    x_C = jnp.concatenate([jnp.zeros((N0, 1), jnp.int32), xyz0], axis=1)

    global_min_coords = jnp.array([0, 0, 0], jnp.int32)
    global_max_coords = jnp.array([31, 31, 31], jnp.int32)

    # encoder shortcuts [enc_s1, enc_s2, enc_s4] (reversed inside forward)
    enc_s1 = jax.random.normal(kf1, (N0 * 8 * 8 * 8, 8), jnp.float32)
    enc_s2 = jax.random.normal(kf2, (N0 * 8 * 8, 16), jnp.float32)
    enc_s4 = jax.random.normal(kf3, (N0 * 8, 32), jnp.float32)
    features = [enc_s1, enc_s2, enc_s4]

    pixel_coordinates = jax.random.uniform(kp, (N0, 2), minval=-1.0, maxval=1.0)

    out = decoder_forward(params, x_F, x_C, stride0, features, pixel_coordinates,
                          global_min_coords, global_max_coords)
    jax.block_until_ready(out)
    print("KERNEL_OK")
</pallas_src>

<mosaic_0001>
module attributes {stable_mosaic.version = 11 : i64} {
  func.func @_decoder_block_kernel(%arg0: i32, %arg1: memref<8x64xbf16, #tpu.memory_space<vmem>>, %arg2: memref<8x8xbf16, #tpu.memory_space<vmem>>, %arg3: memref<8x24xf32, #tpu.memory_space<vmem>>, %arg4: memref<8x256xbf16, #tpu.memory_space<vmem>>, %arg5: memref<64x256xbf16, #tpu.memory_space<vmem>>, %arg6: memref<1x256xf32, #tpu.memory_space<vmem>>, %arg7: memref<256x256xbf16, #tpu.memory_space<vmem>>, %arg8: memref<24x256xbf16, #tpu.memory_space<vmem>>, %arg9: memref<1x256xf32, #tpu.memory_space<vmem>>, %arg10: memref<3x256x256xbf16, #tpu.memory_space<vmem>>, %arg11: memref<3x1x256xf32, #tpu.memory_space<vmem>>, %arg12: memref<3x256x256xbf16, #tpu.memory_space<vmem>>, %arg13: memref<3x1x256xf32, #tpu.memory_space<vmem>>, %arg14: memref<8x256xbf16, #tpu.memory_space<vmem>>, %arg15: memref<256x128xbf16, #tpu.memory_space<vmem>>, %arg16: memref<1x128xf32, #tpu.memory_space<vmem>>, %arg17: memref<128x128xbf16, #tpu.memory_space<vmem>>, %arg18: memref<128x8xbf16, #tpu.memory_space<vmem>>, %arg19: memref<8x128xbf16, #tpu.memory_space<vmem>>, %arg20: memref<8x256xbf16, #tpu.memory_space<vmem>>, %arg21: memref<8x128xf32, #tpu.memory_space<vmem>>) attributes {dimension_semantics = [#tpu.dimension_semantics<parallel>], iteration_bounds = array<i64: 2>, scalar_prefetch = 0 : i64, scratch_operands = 0 : i64, tpu.core_type = #tpu.core_type<tc>, window_params = [{transform_indices = @transform_0, window_bounds = array<i64: 8, 64>}, {transform_indices = @transform_1, window_bounds = array<i64: 8, 8>}, {transform_indices = @transform_2, window_bounds = array<i64: 8, 24>}, {transform_indices = @transform_3, window_bounds = array<i64: 8, 256>}, {pipeline_mode = #tpu.pipeline_mode<synchronous>, transform_indices = @transform_4, window_bounds = array<i64: 64, 256>}, {pipeline_mode = #tpu.pipeline_mode<synchronous>, transform_indices = @transform_5, window_bounds = array<i64: 1, 256>}, {pipeline_mode = #tpu.pipeline_mode<synchronous>, transform_indices = @transform_6, window_bounds = array<i64: 256, 256>}, {pipeline_mode = #tpu.pipeline_mode<synchronous>, transform_indices = @transform_7, window_bounds = array<i64: 24, 256>}, {pipeline_mode = #tpu.pipeline_mode<synchronous>, transform_indices = @transform_8, window_bounds = array<i64: 1, 256>}, {pipeline_mode = #tpu.pipeline_mode<synchronous>, transform_indices = @transform_9, window_bounds = array<i64: 3, 256, 256>}, {pipeline_mode = #tpu.pipeline_mode<synchronous>, transform_indices = @transform_10, window_bounds = array<i64: 3, 1, 256>}, {pipeline_mode = #tpu.pipeline_mode<synchronous>, transform_indices = @transform_11, window_bounds = array<i64: 3, 256, 256>}, {pipeline_mode = #tpu.pipeline_mode<synchronous>, transform_indices = @transform_12, window_bounds = array<i64: 3, 1, 256>}, {pipeline_mode = #tpu.pipeline_mode<synchronous>, transform_indices = @transform_13, window_bounds = array<i64: 8, 256>}, {pipeline_mode = #tpu.pipeline_mode<synchronous>, transform_indices = @transform_14, window_bounds = array<i64: 256, 128>}, {pipeline_mode = #tpu.pipeline_mode<synchronous>, transform_indices = @transform_15, window_bounds = array<i64: 1, 128>}, {pipeline_mode = #tpu.pipeline_mode<synchronous>, transform_indices = @transform_16, window_bounds = array<i64: 128, 128>}, {pipeline_mode = #tpu.pipeline_mode<synchronous>, transform_indices = @transform_17, window_bounds = array<i64: 128, 8>}, {pipeline_mode = #tpu.pipeline_mode<synchronous>, transform_indices = @transform_18, window_bounds = array<i64: 8, 128>}, {transform_indices = @transform_19, window_bounds = array<i64: 8, 256>}, {transform_indices = @transform_20, window_bounds = array<i64: 8, 128>}]} {
    %c0 = arith.constant 0 : index
    %c0_0 = arith.constant 0 : index
    %0 = vector.load %arg1[%c0, %c0_0] : memref<8x64xbf16, #tpu.memory_space<vmem>>, vector<8x64xbf16>
    %c0_1 = arith.constant 0 : index
    %c0_2 = arith.constant 0 : index
    %1 = vector.load %arg5[%c0_1, %c0_2] : memref<64x256xbf16, #tpu.memory_space<vmem>>, vector<64x256xbf16>
    %cst = arith.constant dense<0.000000e+00> : vector<8x256xf32>
    %2 = tpu.matmul %0, %1, %cst {dimension_numbers = #tpu.dot_dimension_numbers<[1], [0], [0], [1], [0, 0, 1, 1], [], []>} : vector<8x64xbf16>, vector<64x256xbf16>, vector<8x256xf32> -> vector<8x256xf32>
    %c0_3 = arith.constant 0 : index
    %c0_4 = arith.constant 0 : index
    %3 = vector.load %arg6[%c0_3, %c0_4] : memref<1x256xf32, #tpu.memory_space<vmem>>, vector<1x256xf32>
    %4 = vector.broadcast %3 : vector<1x256xf32> to vector<8x256xf32>
    %5 = arith.addf %2, %4 : vector<8x256xf32>
    %cst_5 = arith.constant 0.000000e+00 : f32
    %6 = vector.broadcast %cst_5 : f32 to vector<8x256xf32>
    %7 = arith.maximumf %5, %6 : vector<8x256xf32>
    %c0_6 = arith.constant 0 : index
    %c0_7 = arith.constant 0 : index
    %8 = vector.load %arg7[%c0_6, %c0_7] : memref<256x256xbf16, #tpu.memory_space<vmem>>, vector<256x256xbf16>
    %9 = arith.truncf %7 : vector<8x256xf32> to vector<8x256xbf16>
    %cst_8 = arith.constant dense<0.000000e+00> : vector<8x256xf32>
    %10 = tpu.matmul %9, %8, %cst_8 {dimension_numbers = #tpu.dot_dimension_numbers<[1], [0], [0], [1], [0, 0, 1, 1], [], []>} : vector<8x256xbf16>, vector<256x256xbf16>, vector<8x256xf32> -> vector<8x256xf32>
    %c0_9 = arith.constant 0 : index
    %c0_10 = arith.constant 0 : index
    %11 = vector.load %arg3[%c0_9, %c0_10] : memref<8x24xf32, #tpu.memory_space<vmem>>, vector<8x24xf32>
    %c0_11 = arith.constant 0 : index
    %c0_12 = arith.constant 0 : index
    %12 = vector.load %arg8[%c0_11, %c0_12] : memref<24x256xbf16, #tpu.memory_space<vmem>>, vector<24x256xbf16>
    %13 = arith.truncf %11 : vector<8x24xf32> to vector<8x24xbf16>
    %cst_13 = arith.constant dense<0.000000e+00> : vector<8x256xf32>
    %14 = tpu.matmul %13, %12, %cst_13 {dimension_numbers = #tpu.dot_dimension_numbers<[1], [0], [0], [1], [0, 0, 1, 1], [], []>} : vector<8x24xbf16>, vector<24x256xbf16>, vector<8x256xf32> -> vector<8x256xf32>
    %15 = arith.addf %10, %14 : vector<8x256xf32>
    %c0_14 = arith.constant 0 : index
    %c0_15 = arith.constant 0 : index
    %16 = vector.load %arg9[%c0_14, %c0_15] : memref<1x256xf32, #tpu.memory_space<vmem>>, vector<1x256xf32>
    %17 = vector.broadcast %16 : vector<1x256xf32> to vector<8x256xf32>
    %18 = arith.addf %15, %17 : vector<8x256xf32>
    %c0_16 = arith.constant 0 : index
    %c0_17 = arith.constant 0 : index
    %19 = vector.load %arg4[%c0_16, %c0_17] : memref<8x256xbf16, #tpu.memory_space<vmem>>, vector<8x256xbf16>
    %20 = arith.extf %19 : vector<8x256xbf16> to vector<8x256xf32>
    %21 = arith.addf %18, %20 : vector<8x256xf32>
    %c0_18 = arith.constant 0 : index
    %c0_19 = arith.constant 0 : index
    %c0_20 = arith.constant 0 : index
    %22 = vector.load %arg10[%c0_18, %c0_19, %c0_20] : memref<3x256x256xbf16, #tpu.memory_space<vmem>>, vector<1x256x256xbf16>
    %23 = vector.shape_cast %22 : vector<1x256x256xbf16> to vector<256x256xbf16>
    %24 = arith.truncf %21 : vector<8x256xf32> to vector<8x256xbf16>
    %cst_21 = arith.constant dense<0.000000e+00> : vector<8x256xf32>
    %25 = tpu.matmul %24, %23, %cst_21 {dimension_numbers = #tpu.dot_dimension_numbers<[1], [0], [0], [1], [0, 0, 1, 1], [], []>} : vector<8x256xbf16>, vector<256x256xbf16>, vector<8x256xf32> -> vector<8x256xf32>
    %c0_22 = arith.constant 0 : index
    %c0_23 = arith.constant 0 : index
    %c0_24 = arith.constant 0 : index
    %26 = vector.load %arg11[%c0_22, %c0_23, %c0_24] : memref<3x1x256xf32, #tpu.memory_space<vmem>>, vector<1x1x256xf32>
    %27 = vector.shape_cast %26 : vector<1x1x256xf32> to vector<1x256xf32>
    %28 = vector.broadcast %27 : vector<1x256xf32> to vector<8x256xf32>
    %29 = arith.addf %25, %28 : vector<8x256xf32>
    %cst_25 = arith.constant 0.000000e+00 : f32
    %30 = vector.broadcast %cst_25 : f32 to vector<8x256xf32>
    %31 = arith.maximumf %29, %30 : vector<8x256xf32>
    %c0_26 = arith.constant 0 : index
    %c0_27 = arith.constant 0 : index
    %c0_28 = arith.constant 0 : index
    %32 = vector.load %arg12[%c0_26, %c0_27, %c0_28] : memref<3x256x256xbf16, #tpu.memory_space<vmem>>, vector<1x256x256xbf16>
    %33 = vector.shape_cast %32 : vector<1x256x256xbf16> to vector<256x256xbf16>
    %34 = arith.truncf %31 : vector<8x256xf32> to vector<8x256xbf16>
    %cst_29 = arith.constant dense<0.000000e+00> : vector<8x256xf32>
    %35 = tpu.matmul %34, %33, %cst_29 {dimension_numbers = #tpu.dot_dimension_numbers<[1], [0], [0], [1], [0, 0, 1, 1], [], []>} : vector<8x256xbf16>, vector<256x256xbf16>, vector<8x256xf32> -> vector<8x256xf32>
    %c0_30 = arith.constant 0 : index
    %c0_31 = arith.constant 0 : index
    %c0_32 = arith.constant 0 : index
    %36 = vector.load %arg13[%c0_30, %c0_31, %c0_32] : memref<3x1x256xf32, #tpu.memory_space<vmem>>, vector<1x1x256xf32>
    %37 = vector.shape_cast %36 : vector<1x1x256xf32> to vector<1x256xf32>
    %38 = vector.broadcast %37 : vector<1x256xf32> to vector<8x256xf32>
    %39 = arith.addf %35, %38 : vector<8x256xf32>
    %40 = arith.addf %21, %39 : vector<8x256xf32>
    %cst_33 = arith.constant 0.000000e+00 : f32
    %41 = vector.broadcast %cst_33 : f32 to vector<8x256xf32>
    %42 = arith.maximumf %40, %41 : vector<8x256xf32>
    %c1 = arith.constant 1 : index
    %c0_34 = arith.constant 0 : index
    %c0_35 = arith.constant 0 : index
    %43 = vector.load %arg10[%c1, %c0_34, %c0_35] : memref<3x256x256xbf16, #tpu.memory_space<vmem>>, vector<1x256x256xbf16>
    %44 = vector.shape_cast %43 : vector<1x256x256xbf16> to vector<256x256xbf16>
    %45 = arith.truncf %42 : vector<8x256xf32> to vector<8x256xbf16>
    %cst_36 = arith.constant dense<0.000000e+00> : vector<8x256xf32>
    %46 = tpu.matmul %45, %44, %cst_36 {dimension_numbers = #tpu.dot_dimension_numbers<[1], [0], [0], [1], [0, 0, 1, 1], [], []>} : vector<8x256xbf16>, vector<256x256xbf16>, vector<8x256xf32> -> vector<8x256xf32>
    %c1_37 = arith.constant 1 : index
    %c0_38 = arith.constant 0 : index
    %c0_39 = arith.constant 0 : index
    %47 = vector.load %arg11[%c1_37, %c0_38, %c0_39] : memref<3x1x256xf32, #tpu.memory_space<vmem>>, vector<1x1x256xf32>
    %48 = vector.shape_cast %47 : vector<1x1x256xf32> to vector<1x256xf32>
    %49 = vector.broadcast %48 : vector<1x256xf32> to vector<8x256xf32>
    %50 = arith.addf %46, %49 : vector<8x256xf32>
    %cst_40 = arith.constant 0.000000e+00 : f32
    %51 = vector.broadcast %cst_40 : f32 to vector<8x256xf32>
    %52 = arith.maximumf %50, %51 : vector<8x256xf32>
    %c1_41 = arith.constant 1 : index
    %c0_42 = arith.constant 0 : index
    %c0_43 = arith.constant 0 : index
    %53 = vector.load %arg12[%c1_41, %c0_42, %c0_43] : memref<3x256x256xbf16, #tpu.memory_space<vmem>>, vector<1x256x256xbf16>
    %54 = vector.shape_cast %53 : vector<1x256x256xbf16> to vector<256x256xbf16>
    %55 = arith.truncf %52 : vector<8x256xf32> to vector<8x256xbf16>
    %cst_44 = arith.constant dense<0.000000e+00> : vector<8x256xf32>
    %56 = tpu.matmul %55, %54, %cst_44 {dimension_numbers = #tpu.dot_dimension_numbers<[1], [0], [0], [1], [0, 0, 1, 1], [], []>} : vector<8x256xbf16>, vector<256x256xbf16>, vector<8x256xf32> -> vector<8x256xf32>
    %c1_45 = arith.constant 1 : index
    %c0_46 = arith.constant 0 : index
    %c0_47 = arith.constant 0 : index
    %57 = vector.load %arg13[%c1_45, %c0_46, %c0_47] : memref<3x1x256xf32, #tpu.memory_space<vmem>>, vector<1x1x256xf32>
    %58 = vector.shape_cast %57 : vector<1x1x256xf32> to vector<1x256xf32>
    %59 = vector.broadcast %58 : vector<1x256xf32> to vector<8x256xf32>
    %60 = arith.addf %56, %59 : vector<8x256xf32>
    %61 = arith.addf %42, %60 : vector<8x256xf32>
    %cst_48 = arith.constant 0.000000e+00 : f32
    %62 = vector.broadcast %cst_48 : f32 to vector<8x256xf32>
    %63 = arith.maximumf %61, %62 : vector<8x256xf32>
    %c2 = arith.constant 2 : index
    %c0_49 = arith.constant 0 : index
    %c0_50 = arith.constant 0 : index
    %64 = vector.load %arg10[%c2, %c0_49, %c0_50] : memref<3x256x256xbf16, #tpu.memory_space<vmem>>, vector<1x256x256xbf16>
    %65 = vector.shape_cast %64 : vector<1x256x256xbf16> to vector<256x256xbf16>
    %66 = arith.truncf %63 : vector<8x256xf32> to vector<8x256xbf16>
    %cst_51 = arith.constant dense<0.000000e+00> : vector<8x256xf32>
    %67 = tpu.matmul %66, %65, %cst_51 {dimension_numbers = #tpu.dot_dimension_numbers<[1], [0], [0], [1], [0, 0, 1, 1], [], []>} : vector<8x256xbf16>, vector<256x256xbf16>, vector<8x256xf32> -> vector<8x256xf32>
    %c2_52 = arith.constant 2 : index
    %c0_53 = arith.constant 0 : index
    %c0_54 = arith.constant 0 : index
    %68 = vector.load %arg11[%c2_52, %c0_53, %c0_54] : memref<3x1x256xf32, #tpu.memory_space<vmem>>, vector<1x1x256xf32>
    %69 = vector.shape_cast %68 : vector<1x1x256xf32> to vector<1x256xf32>
    %70 = vector.broadcast %69 : vector<1x256xf32> to vector<8x256xf32>
    %71 = arith.addf %67, %70 : vector<8x256xf32>
    %cst_55 = arith.constant 0.000000e+00 : f32
    %72 = vector.broadcast %cst_55 : f32 to vector<8x256xf32>
    %73 = arith.maximumf %71, %72 : vector<8x256xf32>
    %c2_56 = arith.constant 2 : index
    %c0_57 = arith.constant 0 : index
    %c0_58 = arith.constant 0 : index
    %74 = vector.load %arg12[%c2_56, %c0_57, %c0_58] : memref<3x256x256xbf16, #tpu.memory_space<vmem>>, vector<1x256x256xbf16>
    %75 = vector.shape_cast %74 : vector<1x256x256xbf16> to vector<256x256xbf16>
    %76 = arith.truncf %73 : vector<8x256xf32> to vector<8x256xbf16>
    %cst_59 = arith.constant dense<0.000000e+00> : vector<8x256xf32>
    %77 = tpu.matmul %76, %75, %cst_59 {dimension_numbers = #tpu.dot_dimension_numbers<[1], [0], [0], [1], [0, 0, 1, 1], [], []>} : vector<8x256xbf16>, vector<256x256xbf16>, vector<8x256xf32> -> vector<8x256xf32>
    %c2_60 = arith.constant 2 : index
    %c0_61 = arith.constant 0 : index
    %c0_62 = arith.constant 0 : index
    %78 = vector.load %arg13[%c2_60, %c0_61, %c0_62] : memref<3x1x256xf32, #tpu.memory_space<vmem>>, vector<1x1x256xf32>
    %79 = vector.shape_cast %78 : vector<1x1x256xf32> to vector<1x256xf32>
    %80 = vector.broadcast %79 : vector<1x256xf32> to vector<8x256xf32>
    %81 = arith.addf %77, %80 : vector<8x256xf32>
    %82 = arith.addf %63, %81 : vector<8x256xf32>
    %cst_63 = arith.constant 0.000000e+00 : f32
    %83 = vector.broadcast %cst_63 : f32 to vector<8x256xf32>
    %84 = arith.maximumf %82, %83 : vector<8x256xf32>
    %c0_64 = arith.constant 0 : index
    %c0_65 = arith.constant 0 : index
    %85 = vector.load %arg2[%c0_64, %c0_65] : memref<8x8xbf16, #tpu.memory_space<vmem>>, vector<8x8xbf16>
    %86 = arith.extf %85 : vector<8x8xbf16> to vector<8x8xf32>
    %c0_66 = arith.constant 0 : index
    %c0_67 = arith.constant 0 : index
    %87 = vector.load %arg15[%c0_66, %c0_67] : memref<256x128xbf16, #tpu.memory_space<vmem>>, vector<256x128xbf16>
    %88 = arith.truncf %84 : vector<8x256xf32> to vector<8x256xbf16>
    %cst_68 = arith.constant dense<0.000000e+00> : vector<8x128xf32>
    %89 = tpu.matmul %88, %87, %cst_68 {dimension_numbers = #tpu.dot_dimension_numbers<[1], [0], [0], [1], [0, 0, 1, 1], [], []>} : vector<8x256xbf16>, vector<256x128xbf16>, vector<8x128xf32> -> vector<8x128xf32>
    %c0_69 = arith.constant 0 : index
    %c0_70 = arith.constant 0 : index
    %90 = vector.load %arg16[%c0_69, %c0_70] : memref<1x128xf32, #tpu.memory_space<vmem>>, vector<1x128xf32>
    %91 = vector.broadcast %90 : vector<1x128xf32> to vector<8x128xf32>
    %92 = arith.addf %89, %91 : vector<8x128xf32>
    %93 = arith.truncf %92 : vector<8x128xf32> to vector<8x128xbf16>
    %c0_71 = arith.constant 0 : index
    %c0_72 = arith.constant 0 : index
    %94 = vector.load %arg17[%c0_71, %c0_72] : memref<128x128xbf16, #tpu.memory_space<vmem>>, vector<128x128xbf16>
    %cst_73 = arith.constant dense<0.000000e+00> : vector<8x128xf32>
    %95 = tpu.matmul %93, %94, %cst_73 {dimension_numbers = #tpu.dot_dimension_numbers<[1], [0], [0], [1], [0, 0, 1, 1], [], []>} : vector<8x128xbf16>, vector<128x128xbf16>, vector<8x128xf32> -> vector<8x128xf32>
    %96 = arith.extf %93 : vector<8x128xbf16> to vector<8x128xf32>
    %97 = arith.cmpf ogt, %96, %95 : vector<8x128xf32>
    %98 = arith.extui %97 : vector<8x128xi1> to vector<8x128xi32>
    %99 = arith.sitofp %98 : vector<8x128xi32> to vector<8x128xf32>
    %100 = arith.truncf %99 : vector<8x128xf32> to vector<8x128xbf16>
    %c0_74 = arith.constant 0 : index
    %c0_75 = arith.constant 0 : index
    %101 = vector.load %arg18[%c0_74, %c0_75] : memref<128x8xbf16, #tpu.memory_space<vmem>>, vector<128x8xbf16>
    %cst_76 = arith.constant dense<0.000000e+00> : vector<8x8xf32>
    %102 = tpu.matmul %100, %101, %cst_76 {dimension_numbers = #tpu.dot_dimension_numbers<[1], [0], [0], [1], [0, 0, 1, 1], [], []>} : vector<8x128xbf16>, vector<128x8xbf16>, vector<8x8xf32> -> vector<8x8xf32>
    %cst_77 = arith.constant 0.000000e+00 : f32
    %103 = vector.broadcast %cst_77 : f32 to vector<8x8xf32>
    %104 = arith.cmpf ogt, %102, %103 : vector<8x8xf32>
    %105 = arith.extui %104 : vector<8x8xi1> to vector<8x8xi32>
    %106 = arith.sitofp %105 : vector<8x8xi32> to vector<8x8xf32>
    %107 = arith.mulf %86, %106 : vector<8x8xf32>
    %108 = arith.truncf %107 : vector<8x8xf32> to vector<8x8xbf16>
    %c0_78 = arith.constant 0 : index
    %c0_79 = arith.constant 0 : index
    %109 = vector.load %arg14[%c0_78, %c0_79] : memref<8x256xbf16, #tpu.memory_space<vmem>>, vector<8x256xbf16>
    %cst_80 = arith.constant dense<0.000000e+00> : vector<8x256xf32>
    %110 = tpu.matmul %108, %109, %cst_80 {dimension_numbers = #tpu.dot_dimension_numbers<[1], [0], [0], [1], [0, 0, 1, 1], [], []>} : vector<8x8xbf16>, vector<8x256xbf16>, vector<8x256xf32> -> vector<8x256xf32>
    %111 = arith.mulf %84, %110 : vector<8x256xf32>
    %c0_81 = arith.constant 0 : index
    %c0_82 = arith.constant 0 : index
    %112 = vector.load %arg19[%c0_81, %c0_82] : memref<8x128xbf16, #tpu.memory_space<vmem>>, vector<8x128xbf16>
    %cst_83 = arith.constant dense<0.000000e+00> : vector<8x128xf32>
    %113 = tpu.matmul %108, %112, %cst_83 {dimension_numbers = #tpu.dot_dimension_numbers<[1], [0], [0], [1], [0, 0, 1, 1], [], []>} : vector<8x8xbf16>, vector<8x128xbf16>, vector<8x128xf32> -> vector<8x128xf32>
    %114 = arith.mulf %92, %113 : vector<8x128xf32>
    %c0_84 = arith.constant 0 : index
    %c0_85 = arith.constant 0 : index
    %115 = vector.load %arg21[%c0_84, %c0_85] : memref<8x128xf32, #tpu.memory_space<vmem>>, vector<8x128xf32>
    tpu.vector_store %arg21[%c0_84, %c0_85], %114 {strides = array<i32>} : memref<8x128xf32, #tpu.memory_space<vmem>>, vector<8x128xf32>,
    %116 = arith.truncf %111 : vector<8x256xf32> to vector<8x256xbf16>
    %c0_86 = arith.constant 0 : index
    %c0_87 = arith.constant 0 : index
    %117 = vector.load %arg20[%c0_86, %c0_87] : memref<8x256xbf16, #tpu.memory_space<vmem>>, vector<8x256xbf16>
    tpu.vector_store %arg20[%c0_86, %c0_87], %116 {strides = array<i32>} : memref<8x256xbf16, #tpu.memory_space<vmem>>, vector<8x256xbf16>,
    return
  }
  func.func @transform_0(%arg0: i32) -> (i32, i32) {
    %c0_i32 = arith.constant 0 : i32
    %c0_i32_0 = arith.constant 0 : i32
    return %arg0, %c0_i32 : i32, i32
  }
  func.func @transform_1(%arg0: i32) -> (i32, i32) {
    %c0_i32 = arith.constant 0 : i32
    %c0_i32_0 = arith.constant 0 : i32
    return %arg0, %c0_i32 : i32, i32
  }
  func.func @transform_2(%arg0: i32) -> (i32, i32) {
    %c0_i32 = arith.constant 0 : i32
    %c0_i32_0 = arith.constant 0 : i32
    return %arg0, %c0_i32 : i32, i32
  }
  func.func @transform_3(%arg0: i32) -> (i32, i32) {
    %c0_i32 = arith.constant 0 : i32
    %c0_i32_0 = arith.constant 0 : i32
    return %arg0, %c0_i32 : i32, i32
  }
  func.func @transform_4(%arg0: i32) -> (i32, i32) {
    %c0_i32 = arith.constant 0 : i32
    %c0_i32_0 = arith.constant 0 : i32
    %c0_i32_1 = arith.constant 0 : i32
    return %c0_i32, %c0_i32_0 : i32, i32
  }
  func.func @transform_5(%arg0: i32) -> (i32, i32) {
    %c0_i32 = arith.constant 0 : i32
    %c0_i32_0 = arith.constant 0 : i32
    %c0_i32_1 = arith.constant 0 : i32
    return %c0_i32, %c0_i32_0 : i32, i32
  }
  func.func @transform_6(%arg0: i32) -> (i32, i32) {
    %c0_i32 = arith.constant 0 : i32
    %c0_i32_0 = arith.constant 0 : i32
    %c0_i32_1 = arith.constant 0 : i32
    return %c0_i32, %c0_i32_0 : i32, i32
  }
  func.func @transform_7(%arg0: i32) -> (i32, i32) {
    %c0_i32 = arith.constant 0 : i32
    %c0_i32_0 = arith.constant 0 : i32
    %c0_i32_1 = arith.constant 0 : i32
    return %c0_i32, %c0_i32_0 : i32, i32
  }
  func.func @transform_8(%arg0: i32) -> (i32, i32) {
    %c0_i32 = arith.constant 0 : i32
    %c0_i32_0 = arith.constant 0 : i32
    %c0_i32_1 = arith.constant 0 : i32
    return %c0_i32, %c0_i32_0 : i32, i32
  }
  func.func @transform_9(%arg0: i32) -> (i32, i32, i32) {
    %c0_i32 = arith.constant 0 : i32
    %c0_i32_0 = arith.constant 0 : i32
    %c0_i32_1 = arith.constant 0 : i32
    %c0_i32_2 = arith.constant 0 : i32
    return %c0_i32, %c0_i32_0, %c0_i32_1 : i32, i32, i32
  }
  func.func @transform_10(%arg0: i32) -> (i32, i32, i32) {
    %c0_i32 = arith.constant 0 : i32
    %c0_i32_0 = arith.constant 0 : i32
    %c0_i32_1 = arith.constant 0 : i32
    %c0_i32_2 = arith.constant 0 : i32
    return %c0_i32, %c0_i32_0, %c0_i32_1 : i32, i32, i32
  }
  func.func @transform_11(%arg0: i32) -> (i32, i32, i32) {
    %c0_i32 = arith.constant 0 : i32
    %c0_i32_0 = arith.constant 0 : i32
    %c0_i32_1 = arith.constant 0 : i32
    %c0_i32_2 = arith.constant 0 : i32
    return %c0_i32, %c0_i32_0, %c0_i32_1 : i32, i32, i32
  }
  func.func @transform_12(%arg0: i32) -> (i32, i32, i32) {
    %c0_i32 = arith.constant 0 : i32
    %c0_i32_0 = arith.constant 0 : i32
    %c0_i32_1 = arith.constant 0 : i32
    %c0_i32_2 = arith.constant 0 : i32
    return %c0_i32, %c0_i32_0, %c0_i32_1 : i32, i32, i32
  }
  func.func @transform_13(%arg0: i32) -> (i32, i32) {
    %c0_i32 = arith.constant 0 : i32
    %c0_i32_0 = arith.constant 0 : i32
    %c0_i32_1 = arith.constant 0 : i32
    return %c0_i32, %c0_i32_0 : i32, i32
  }
  func.func @transform_14(%arg0: i32) -> (i32, i32) {
    %c0_i32 = arith.constant 0 : i32
    %c0_i32_0 = arith.constant 0 : i32
    %c0_i32_1 = arith.constant 0 : i32
    return %c0_i32, %c0_i32_0 : i32, i32
  }
  func.func @transform_15(%arg0: i32) -> (i32, i32) {
    %c0_i32 = arith.constant 0 : i32
    %c0_i32_0 = arith.constant 0 : i32
    %c0_i32_1 = arith.constant 0 : i32
    return %c0_i32, %c0_i32_0 : i32, i32
  }
  func.func @transform_16(%arg0: i32) -> (i32, i32) {
    %c0_i32 = arith.constant 0 : i32
    %c0_i32_0 = arith.constant 0 : i32
    %c0_i32_1 = arith.constant 0 : i32
    return %c0_i32, %c0_i32_0 : i32, i32
  }
  func.func @transform_17(%arg0: i32) -> (i32, i32) {
    %c0_i32 = arith.constant 0 : i32
    %c0_i32_0 = arith.constant 0 : i32
    %c0_i32_1 = arith.constant 0 : i32
    return %c0_i32, %c0_i32_0 : i32, i32
  }
  func.func @transform_18(%arg0: i32) -> (i32, i32) {
    %c0_i32 = arith.constant 0 : i32
    %c0_i32_0 = arith.constant 0 : i32
    %c0_i32_1 = arith.constant 0 : i32
    return %c0_i32, %c0_i32_0 : i32, i32
  }
  func.func @transform_19(%arg0: i32) -> (i32, i32) {
    %c0_i32 = arith.constant 0 : i32
    %c0_i32_0 = arith.constant 0 : i32
    return %arg0, %c0_i32 : i32, i32
  }
  func.func @transform_20(%arg0: i32) -> (i32, i32) {
    %c0_i32 = arith.constant 0 : i32
    %c0_i32_0 = arith.constant 0 : i32
    return %arg0, %c0_i32 : i32, i32
  }
}

</mosaic_0001>

<bundles_post_ra>
// kernel: tpu_custom_call.1
= control target key start
LH: loop header
LB: loop body
LE: loop exit
PB: predicated region body
PF: predicated region fallthrough
CT: control target
= control target key end

     0   :  { %s6152_s0 = inlined_call_operand.hbm [shape: bf16[16,64], index: 0, kind: input, shape index: {}]   ;;  %s6153_s1 = inlined_call_operand.vmem [shape: bf16[16,8], index: 1, kind: input, shape index: {}]   ;;  %s6154_s2 = inlined_call_operand.hbm [shape: f32[16,24], index: 2, kind: input, shape index: {}]   ;;  %s6155_s3 = inlined_call_operand.hbm [shape: bf16[16,256], index: 3, kind: input, shape index: {}]   ;;  %s6156_s4 = inlined_call_operand.hbm [shape: bf16[64,256], index: 4, kind: input, shape index: {}]   ;;  %s6157_s5 = inlined_call_operand.hbm [shape: f32[1,256], index: 5, kind: input, shape index: {}]   ;;  %s6158_s6 = inlined_call_operand.hbm [shape: bf16[256,256], index: 6, kind: input, shape index: {}]   ;;  %s6159_s7 = inlined_call_operand.hbm [shape: bf16[24,256], index: 7, kind: input, shape index: {}]   ;;  %s6160_s8 = inlined_call_operand.hbm [shape: f32[1,256], index: 8, kind: input, shape index: {}]   ;;  %s6161_s9 = inlined_call_operand.hbm [shape: bf16[3,256,256], index: 9, kind: input, shape index: {}]   ;;  %s6162_s10 = inlined_call_operand.hbm [shape: f32[3,1,256], index: 10, kind: input, shape index: {}]   ;;  %s6163_s11 = inlined_call_operand.hbm [shape: bf16[3,256,256], index: 11, kind: input, shape index: {}]   ;;  %s6164_s12 = inlined_call_operand.hbm [shape: f32[3,1,256], index: 12, kind: input, shape index: {}]   ;;  %s6165_s13 = inlined_call_operand.hbm [shape: bf16[8,256], index: 13, kind: input, shape index: {}]   ;;  %s6166_s14 = inlined_call_operand.vmem [shape: bf16[256,128], index: 14, kind: input, shape index: {}]   ;;  %s6167_s15 = inlined_call_operand.hbm [shape: f32[1,128], index: 15, kind: input, shape index: {}]   ;;  %s6168_s16 = inlined_call_operand.hbm [shape: bf16[128,128], index: 16, kind: input, shape index: {}]   ;;  %s6169_s17 = inlined_call_operand.vmem [shape: bf16[128,8], index: 17, kind: input, shape index: {}]   ;;  %s6170_s18 = inlined_call_operand.vmem [shape: bf16[8,128], index: 18, kind: input, shape index: {}]   ;;  %s6171_s19 = inlined_call_operand.hbm [shape: bf16[16,256], index: 19, kind: output, shape index: {0}]   ;;  %s6172_s20 = inlined_call_operand.hbm [shape: f32[16,128], index: 20, kind: output, shape index: {1}]  }
   0x1   :  { %6209 = sst [smem:[#allocation45_spill]] %s6152_s0 }
   0x2   :  { %6210 = sst [smem:[#allocation46_spill]] %s6153_s1 }
   0x3   :  { %6211 = sst [smem:[#allocation47_spill]] %s6154_s2 }
   0x4   :  { %6212 = sst [smem:[#allocation48_spill]] %s6155_s3 }
   0x5   :  { %6213 = sst [smem:[#allocation49_spill]] %s6156_s4 }
   0x6   :  { %6214 = sst [smem:[#allocation50_spill]] %s6157_s5 }
   0x7   :  { %6215 = sst [smem:[#allocation51_spill]] %s6158_s6 }
   0x8   :  { %6216 = sst [smem:[#allocation52_spill]] %s6160_s8 }
   0x9   :  { %6217 = sst [smem:[#allocation53_spill]] %s6162_s10 }
   0xa   :  { %6218 = sst [smem:[#allocation54_spill]] %s6164_s12 }
   0xb   :  { %6219 = sst [smem:[#allocation55_spill]] %s6165_s13 }
   0xc   :  { %6220 = sst [smem:[#allocation56_spill]] %s6166_s14 }
   0xd   :  { %6221 = sst [smem:[#allocation57_spill]] %s6167_s15 }
   0xe   :  { %6222 = sst [smem:[#allocation58_spill]] %s6168_s16 }
   0xf   :  { %6223 = sst [smem:[#allocation59_spill]] %s6169_s17 }
  0x10   :  { %6224 = sst [smem:[#allocation60_spill]] %s6170_s18 }
  0x11   :  { %6225 = sst [smem:[#allocation61_spill]] %s6171_s19 }
  0x12   :  { %6226 = sst [smem:[#allocation62_spill]] %s6172_s20 }
  0x13   :  { %26 = vsyncpa [#allocation3], 0 }
  0x14   :  { %28 = vsyncpa [#allocation3 + $0x1], 0 }
  0x15   :  { %29 = vsyncpa [#allocation6], 0 }
  0x16   :  { %31 = vsyncpa [#allocation6 + $0x1], 0 }
  0x17   :  { %32 = vsyncpa [#allocation9], 0 }
  0x18   :  { %33 = vsyncpa [#allocation12], 0 }
  0x19   :  { %34 = vsyncpa [#allocation15], 0 }
  0x1a   :  { %35 = vsyncpa [#allocation18], 0 }
  0x1b   :  { %36 = vsyncpa [#allocation21], 0 }
  0x1c   :  { %37 = vsyncpa [#allocation24], 0 }
  0x1d   :  { %38 = vsyncpa [#allocation4], 0 }
  0x1e   :  { %40 = vsyncpa [#allocation4 + $0x1], 0 }
  0x1f   :  { %41 = vsyncpa [#allocation28], 0 }
  0x20   :  { %43 = vsyncpa [#allocation28 + $0x1], 0  ;;  %s5356_s1 = smov 0   ;;  %s5358_s22 = smov 0  }
  0x21   :  { %s5360_s23 = smov 0   ;;  %s5362_s24 = smov 0  }
  0x22 LB: > { %6227 = sst [smem:[#allocation39_spill]] %s5210_s1  ;;  %s5224_s2 = smov [#allocation8]   ;;  %s5222_s24 = sphi %s5362_s24, %s6289_s24   ;;  %s5218_s23 = sphi %s5360_s23, %s6291_s23   ;;  %s5214_s22 = sphi %s5358_s22, %s6293_s22   ;;  %s5210_s1 = sphi %s5356_s1, %s6292_s1  }
  0x23   : > { %6228 = sst [smem:[#allocation40_spill]] %s5218_s23  ;;  %s537_s25 = sshll.u32 %s5224_s2, 4  ;;  %s5382_s25 = int_to_ptr.vmem [resolvable:$true] %s537_s25 }
  0x24   : > { %s5377_s3 = sadd.s32 4294967295, %s5222_s24   ;;  %p3671_p0 = scmp.ge.s32.totalorder %s5222_s24, 1 }
  0x25   : > { %p6184_p1 = scmp.eq.s32.totalorder %s5377_s3, 0  ;;  %p525_p2 = scmp.lt.s32.totalorder %s5222_s24, 3 }
  0x26   : > { %s5225_s27 = smov [#allocation11]   ;;  %s5226_s29 = smov [#allocation14]  }
  0x27   : > { %p5384_p3 = pnand %p3671_p0, %p525_p2  ;;  %s561_s28 = sshll.u32 %s5225_s27, 4  ;;  %s5397_s28 = int_to_ptr.vmem [resolvable:$true] %s561_s28 }
  0x28   : > { %s588_s30 = sshll.u32 %s5226_s29, 4  ;;  %s6232_s2 = sld [smem:[#allocation49_spill]]  ;;  %s5399_s30 = int_to_ptr.vmem [resolvable:$true] %s588_s30 }
  0x29   : > { %s6229_s26 = scalar_select %p5384_p3, 1, 0 }
  0x2a   : > { %p4149_p5 = pneg %p5384_p3 }
  0x2b   : > { %6230 = sst [smem:[#allocation41_spill]] %s6229_s26 }
  0x2c   : > { %p5393_p6 = pnand %p4149_p5, %p6184_p1 }
  0x2e   : > { %s6231_s4 = scalar_select %p5393_p6, 1, 0 }
  0x2f   : > { %s4670_s20 = scalar_lea.hbm %s6232_s2, 1024  ;;  %p5409_p8 = pneg %p5393_p6 }
  0x30   : > { %p4671_p7 = scmp.ne.s32.totalorder %s6232_s2, %s4670_s20  ;;  %p4677_p11 = scmp.lt.u32.totalorder %s4670_s20, %s6232_s2 }
  0x31   : > { %s6233_s27 = scalar_select %p5409_p8, 1, 0 }
  0x32   : > { %p4673_p9 = pnand %p5409_p8, %p4671_p7 }
  0x34   : > { %p4674_p10 = pneg %p4673_p9 }
  0x36   : > { %p4679_p12 = pnand %p4677_p11, %p4674_p10 }
  0x38   : > { %4682 = shalt.err (!%p4679_p12)
}
  0x39   : > { %s4683_s18 = scalar_lea.vmem %s5382_s25, 1024  ;;  %p4691_p5 = scmp.lt.s32.totalorder %s5382_s25, %s5382_s25 }
  0x3a   : > { %p4684_p13 = scmp.ne.s32.totalorder %s5382_s25, %s4683_s18  ;;  %p4692_p4 = scmp.lt.s32.totalorder %s4683_s18, %s4683_s18 }
  0x3c   : > { %p4686_p0 = pnand %p4684_p13, %p5409_p8  ;;  %p4693_p7 = por %p4692_p4, %p4691_p5 }
  0x3e   : > { %p4687_p2 = pneg %p4686_p0 }
  0x40   : > { %p4694_p9 = pnand %p4693_p7, %p4687_p2 }
  0x42   : > { %4697 = shalt.err (!%p4694_p9)
}
  0x43   : > { %s6186_s19 = smov 128   ;;  %s6188_s17 = smov 8  }
  0x44   : > { %4152 = dma.hbm_to_vmem [thread:$0]  (!%p5393_p6), %s6232_s2, 1024, %s5382_s25, [#allocation9], %s6186_s19, %s6186_s19, %s6188_s17  }
  0x45   : > { %s6234_s6 = sld [smem:[#allocation51_spill]] }
  0x4b   : > { %s4698_s18 = scalar_lea.hbm %s6234_s6, 4096 }
  0x4c   : > { %p4699_p4 = scmp.ne.s32.totalorder %s6234_s6, %s4698_s18  ;;  %p4705_p12 = scmp.lt.u32.totalorder %s4698_s18, %s6234_s6 }
  0x4e   : > { %p4701_p10 = pnand %p4699_p4, %p5409_p8 }
  0x50   : > { %p4702_p11 = pneg %p4701_p10 }
  0x52   : > { %p4707_p13 = pnand %p4705_p12, %p4702_p11 }
  0x54   : > { %4710 = shalt.err (!%p4707_p13)
}
  0x55   : > { %s4711_s25 = scalar_lea.vmem %s5397_s28, 4096  ;;  %p4719_p7 = scmp.lt.s32.totalorder %s5397_s28, %s5397_s28 }
  0x56   : > { %p4712_p0 = scmp.ne.s32.totalorder %s5397_s28, %s4711_s25  ;;  %p4720_p9 = scmp.lt.s32.totalorder %s4711_s25, %s4711_s25 }
  0x58   : > { %p4714_p2 = pnand %p4712_p0, %p5409_p8  ;;  %p4721_p4 = por %p4720_p9, %p4719_p7 }
  0x5a   : > { %p4715_p5 = pneg %p4714_p2 }
  0x5c   : > { %p4722_p10 = pnand %p4721_p4, %p4715_p5 }
  0x5e   : > { %4725 = shalt.err (!%p4722_p10)
}
  0x5f   : > { %4158 = dma.hbm_to_vmem [thread:$0]  (!%p5393_p6), %s6234_s6, 4096, %s5397_s28, [#allocation12], %s6186_s19, %s6186_s19, %s6188_s17  }
  0x60   : > { %s6235_s8 = sld [smem:[#allocation52_spill]] }
  0x66   : > { %s4726_s20 = scalar_lea.hbm %s6235_s8, 32 }
  0x67   : > { %p4727_p11 = scmp.ne.s32.totalorder %s6235_s8, %s4726_s20  ;;  %p4733_p0 = scmp.lt.u32.totalorder %s4726_s20, %s6235_s8 }
  0x69   : > { %p4729_p12 = pnand %p4727_p11, %p5409_p8 }
  0x6b   : > { %p4730_p13 = pneg %p4729_p12 }
  0x6d   : > { %p4735_p2 = pnand %p4733_p0, %p4730_p13 }
  0x6f   : > { %4738 = shalt.err (!%p4735_p2)
}
  0x70   : > { %s4739_s28 = scalar_lea.vmem %s5399_s30, 32  ;;  %p4747_p4 = scmp.lt.s32.totalorder %s5399_s30, %s5399_s30 }
  0x71   : > { %p4740_p5 = scmp.ne.s32.totalorder %s5399_s30, %s4739_s28  ;;  %p4748_p10 = scmp.lt.s32.totalorder %s4739_s28, %s4739_s28 }
  0x73   : > { %p4742_p7 = pnand %p4740_p5, %p5409_p8  ;;  %p4749_p11 = por %p4748_p10, %p4747_p4 }
  0x75   : > { %p4743_p9 = pneg %p4742_p7 }
  0x77   : > { %p4750_p12 = pnand %p4749_p11, %p4743_p9 }
  0x79   : > { %4753 = shalt.err (!%p4750_p12)
}
  0x7a   : > { %4164 = dma.hbm_to_vmem [thread:$0]  (!%p5393_p6), %s6235_s8, 32, %s5399_s30, [#allocation15]  }
  0x7b   : > { %s5229_s14 = smov [#allocation17]   ;;  %s6236_s10 = sld [smem:[#allocation53_spill]] }
  0x7c   : > { %s611_s16 = sshll.u32 %s5229_s14, 4  ;;  %s612_s16 = int_to_ptr.vmem [resolvable:$true] %s611_s16 }
  0x81   : > { %s4754_s0 = scalar_lea.hbm %s6236_s10, 96 }
  0x82   : > { %p4755_p13 = scmp.ne.s32.totalorder %s6236_s10, %s4754_s0  ;;  %p4761_p5 = scmp.lt.u32.totalorder %s4754_s0, %s6236_s10 }
  0x84   : > { %p4757_p0 = pnand %p4755_p13, %p5409_p8 }
  0x86   : > { %p4758_p2 = pneg %p4757_p0 }
  0x88   : > { %p4763_p7 = pnand %p4761_p5, %p4758_p2 }
  0x8a   : > { %4766 = shalt.err (!%p4763_p7)
}
  0x8b   : > { %s4767_s30 = scalar_lea.vmem %s612_s16, 96  ;;  %p4775_p11 = scmp.lt.s32.totalorder %s612_s16, %s612_s16 }
  0x8c   : > { %p4768_p9 = scmp.ne.s32.totalorder %s612_s16, %s4767_s30  ;;  %p4776_p12 = scmp.lt.s32.totalorder %s4767_s30, %s4767_s30 }
  0x8e   : > { %p4770_p4 = pnand %p4768_p9, %p5409_p8  ;;  %p4777_p1 = por %p4776_p12, %p4775_p11 }
  0x90   : > { %p4771_p10 = pneg %p4770_p4 }
  0x92   : > { %p4778_p3 = pnand %p4777_p1, %p4771_p10 }
  0x94   : > { %4781 = shalt.err (!%p4778_p3)
}
  0x95   : > { %s5230_s25 = smov 32   ;;  %s5231_s13 = smov 2  }
  0x96   : > { %4170 = dma.hbm_to_vmem [thread:$0]  (!%p5393_p6), %s6236_s10, 96, %s612_s16, [#allocation18], %s5230_s25, %s5230_s25, %s5231_s13  }
  0x97   : > { %s5232_s20 = smov [#allocation20]   ;;  %s5233_s21 = smov [#allocation23]  }
  0x98   : > { %s637_s0 = sshll.u32 %s5232_s20, 4  ;;  %s665_s29 = sshll.u32 %s5233_s21, 4  ;;  %s638_s0 = int_to_ptr.vmem [resolvable:$true] %s637_s0  ;;  %s5500_s29 = int_to_ptr.vmem [resolvable:$true] %s665_s29 }
  0x99   : > { %s6237_s12 = sld [smem:[#allocation54_spill]] }
  0x9f   : > { %s4782_s30 = scalar_lea.hbm %s6237_s12, 96 }
  0xa0   : > { %p4783_p1 = scmp.ne.s32.totalorder %s6237_s12, %s4782_s30  ;;  %p4789_p0 = scmp.lt.u32.totalorder %s4782_s30, %s6237_s12 }
  0xa2   : > { %p4785_p3 = pnand %p4783_p1, %p5409_p8 }
  0xa4   : > { %p4786_p13 = pneg %p4785_p3 }
  0xa6   : > { %p4791_p2 = pnand %p4789_p0, %p4786_p13 }
  0xa8   : > { %4794 = shalt.err (!%p4791_p2)
}
  0xa9   : > { %s4795_s26 = scalar_lea.vmem %s638_s0, 96  ;;  %p4803_p4 = scmp.lt.s32.totalorder %s638_s0, %s638_s0 }
  0xaa   : > { %p4796_p5 = scmp.ne.s32.totalorder %s638_s0, %s4795_s26  ;;  %p4804_p10 = scmp.lt.s32.totalorder %s4795_s26, %s4795_s26 }
  0xac   : > { %p4798_p7 = pnand %p4796_p5, %p5409_p8  ;;  %p4805_p11 = por %p4804_p10, %p4803_p4 }
  0xae   : > { %p4799_p9 = pneg %p4798_p7 }
  0xb0   : > { %p4806_p12 = pnand %p4805_p11, %p4799_p9 }
  0xb2   : > { %4809 = shalt.err (!%p4806_p12)
}
  0xb3   : > { %4176 = dma.hbm_to_vmem [thread:$0]  (!%p5393_p6), %s6237_s12, 96, %s638_s0, [#allocation21], %s5230_s25, %s5230_s25, %s5231_s13  }
  0xb4   : > { %s6238_s15 = sld [smem:[#allocation57_spill]] }
  0xba   : > { %s4810_s18 = scalar_lea.hbm %s6238_s15, 16 }
  0xbb   : > { %p4811_p1 = scmp.ne.s32.totalorder %s6238_s15, %s4810_s18  ;;  %p4817_p0 = scmp.lt.u32.totalorder %s4810_s18, %s6238_s15 }
  0xbd   : > { %p4813_p3 = pnand %p4811_p1, %p5409_p8 }
  0xbf   : > { %p4814_p13 = pneg %p4813_p3 }
  0xc1   : > { %p4819_p2 = pnand %p4817_p0, %p4814_p13 }
  0xc3   : > { %4822 = shalt.err (!%p4819_p2)
}
  0xc4   : > { %s4823_s25 = scalar_lea.vmem %s5500_s29, 16  ;;  %s4830_s13 = scalar_lea.vmem %s5500_s29, 32 }
  0xc5   : > { %p4824_p5 = scmp.ne.s32.totalorder %s5500_s29, %s4823_s25  ;;  %p4831_p4 = scmp.lt.s32.totalorder %s5500_s29, %s5500_s29 }
  0xc6   : > { %p4832_p10 = scmp.lt.s32.totalorder %s4830_s13, %s4823_s25 }
  0xc7   : > { %p4826_p7 = pnand %p4824_p5, %p5409_p8 }
  0xc8   : > { %p4833_p11 = por %p4832_p10, %p4831_p4 }
  0xc9   : > { %p4827_p9 = pneg %p4826_p7 }
  0xcb   : > { %p4834_p12 = pnand %p4833_p11, %p4827_p9 }
  0xcd   : > { %4837 = shalt.err (!%p4834_p12)
}
  0xce   : > { %4182 = dma.hbm_to_vmem [thread:$0]  (!%p5393_p6), %s6238_s15, 16, %s5500_s29, [#allocation24]  }
  0xcf   : > { %s3670_s19 = sadd.s32 4294967294, %s5222_s24   ;;  %s5546_s17 = sadd.s32 1, %s5222_s24  }
  0xd0   : > { %6239 = sst [smem:[#allocation42_spill]] %s5546_s17  ;;  %s53_s20 = ssub.s32 %s5222_s24, %s5546_s17 }
  0xd1   : > { %s56_s21 = sadd.s32 1, %s5218_s23  ;;  %p54_p1 = scmp.eq.s32.totalorder %s53_s20, 0 }
  0xd2   : > { %p63_p3 = scmp.ne.s32.totalorder %s5218_s23, %s5214_s22  ;;  %p64_p13 = scmp.eq.s32.totalorder %s5222_s24, 0 }
  0xd3   : > { %p69_p0 = scmp.ne.s32.totalorder %s5214_s22, %s5210_s1  ;;  %p6241_p5 = scmp.eq.s32.totalorder %s5377_s3, 0 }
  0xd4   : > { %s5557_s18 = scalar_select %p54_p1, %s5218_s23, %s56_s21  }
  0xd5   : > { %p65_p2 = por %p64_p13, %p63_p3  ;;  %p5561_p7 = por %p6241_p5, %p69_p0 }
  0xd6   : > { %6240 = sst [smem:[#allocation43_spill]] %s5557_s18  ;;  %p486_p9 = scmp.eq.s32.totalorder %s5377_s3, 1 }
  0xd7   : > { %s6242_s28 = scalar_select %p5561_p7, 1, 0 }
  0xd8   : > { %p492_p4 = scmp.eq.s32.totalorder %s3670_s19, 1  ;;  %p4215_p10 = scmp.lt.s32.totalorder %s5222_s24, 2 }
  0xd9   : > { %s5568_s29 = sand.u32 1, %s5218_s23   ;;  %p5570_p11 = por %p486_p9, %p63_p3 }
  0xda   : > { %p5574_p12 = por %p492_p4, %p69_p0  ;;  %p5578_p1 = pnand %p4215_p10, %p65_p2 }
  0xdb   : > { %s6243_s30 = scalar_select %p5570_p11, 1, 0 }
  0xdc   : > { %s6244_s14 = scalar_select %p5574_p12, 1, 0 }
  0xdd   : > { %s6246_s16 = scalar_select %p5578_p1, 1, 0 }
  0xde   : > { %6245 = sst [smem:[#allocation44_spill]] %s6244_s14  ;;  %s720_s25 = sand.u32 1, %s5222_s24  }
  0xdf   : > { %s6191_s13 = sshll.u32 %s5568_s29, 3  ;;  %s6192_s0 = sshll.u32 %s5222_s24, 7 }
  0xe0   : > { %s724_s26 = scalar_lea.vmem [#allocation5], %s6191_s13  ;;  %s6247_s2 = sld [smem:[#allocation47_spill]] }
  0xe1   : > { %s731_s19 = sshll.u32 %s724_s26, 4  ;;  %s5596_s8 = scalar_lea.sflag [#allocation6], %s720_s25  ;;  %s5594_s19 = int_to_ptr.vmem [resolvable:$true] %s731_s19 }
  0xe2   : > { %p5602_p13 = pneg %p5578_p1 }
  0xe4   : > { %s6248_s13 = scalar_select %p5602_p13, 1, 0 }
  0xe6   : > { %s5592_s6 = scalar_lea.hbm %s6247_s2, %s6192_s0  ;;  %s4843_s21 = scalar_lea.hbm %s6247_s2, 256 }
  0xe7   : > { %s4838_s10 = scalar_lea.hbm %s5592_s6, 128  ;;  %p4844_p5 = scmp.lt.u32.totalorder %s5592_s6, %s6247_s2 }
  0xe8   : > { %p4839_p3 = scmp.ne.s32.totalorder %s5592_s6, %s4838_s10  ;;  %p4845_p9 = scmp.lt.u32.totalorder %s4843_s21, %s4838_s10 }
  0xe9   : > { %p4847_p10 = scmp.lt.u32.totalorder %s4838_s10, %s5592_s6 }
  0xea   : > { %p4841_p0 = pnand %p5602_p13, %p4839_p3  ;;  %p4846_p4 = por %p4845_p9, %p4844_p5 }
  0xec   : > { %p4842_p2 = pneg %p4841_p0  ;;  %p4848_p12 = por %p4847_p10, %p4846_p4 }
  0xee   : > { %p4849_p11 = pnand %p4848_p12, %p4842_p2 }
  0xf0   : > { %4852 = shalt.err (!%p4849_p11)
}
  0xf1   : > { %s4853_s25 = scalar_lea.vmem %s5594_s19, 128  ;;  %s5234_s26 = smov [#allocation5]  }
  0xf2   : > { %p4854_p3 = scmp.ne.s32.totalorder %s5594_s19, %s4853_s25  ;;  %s4858_s20 = sshll.u32 %s5234_s26, 4  ;;  %s4859_s20 = int_to_ptr.vmem [resolvable:$false] %s4858_s20 }
  0xf3   : > { %s4860_s12 = scalar_lea.vmem %s4859_s20, 256  ;;  %p4861_p6 = scmp.lt.s32.totalorder %s5594_s19, %s4859_s20 }
  0xf4   : > { %p4856_p0 = pnand %p4854_p3, %p5602_p13  ;;  %p4862_p8 = scmp.lt.s32.totalorder %s4860_s12, %s4853_s25 }
  0xf6   : > { %p4857_p7 = pneg %p4856_p0  ;;  %p4863_p5 = por %p4862_p8, %p4861_p6 }
  0xf8   : > { %p4864_p9 = pnand %p4863_p5, %p4857_p7 }
  0xfa   : > { %4867 = shalt.err (!%p4864_p9)
}
  0xfb   : > { %4192 = dma.hbm_to_vmem [thread:$0]  (!%p5578_p1), %s5592_s6, 128, %s5594_s19, %s5596_s8  }
  0xfc   : > { %s6249_s10 = sshll.u32 %s5222_s24, 7  ;;  %s6250_s2 = sld [smem:[#allocation48_spill]] }
  0xfd   : > { %s5235_s15 = smov [#allocation10]   ;;  %s5236_s25 = smov [#allocation13]  }
  0xfe   : > { %s551_s20 = sshll.u32 %s5235_s15, 4  ;;  %s574_s12 = sshll.u32 %s5236_s25, 4  ;;  %s552_s20 = int_to_ptr.vmem [resolvable:$true] %s551_s20  ;;  %s5633_s12 = int_to_ptr.vmem [resolvable:$true] %s574_s12 }
  0xff   : > { %s6251_s5 = sld [smem:[#allocation50_spill]]  ;;  %p6252_p8 = scmp.ne.s32.totalorder %s6233_s27, 0 }
 0x102   : > { %s5631_s26 = scalar_lea.hbm %s6250_s2, %s6249_s10 }
 0x105   : > { %s4868_s17 = scalar_lea.hbm %s6251_s5, 32 }
 0x106   : > { %p4869_p6 = scmp.ne.s32.totalorder %s6251_s5, %s4868_s17  ;;  %p4875_p12 = scmp.lt.u32.totalorder %s4868_s17, %s6251_s5 }
 0x108   : > { %p4871_p7 = pnand %p4869_p6, %p6252_p8 }
 0x10a   : > { %p4872_p11 = pneg %p4871_p7 }
 0x10c   : > { %p4877_p2 = pnand %p4875_p12, %p4872_p11 }
 0x10e   : > { %4880 = shalt.err (!%p4877_p2)
}
 0x10f   : > { %s4881_s15 = scalar_lea.vmem %s552_s20, 32  ;;  %p4889_p0 = scmp.lt.s32.totalorder %s552_s20, %s552_s20 }
 0x110   : > { %p4882_p4 = scmp.ne.s32.totalorder %s552_s20, %s4881_s15  ;;  %p4890_p5 = scmp.lt.s32.totalorder %s4881_s15, %s4881_s15 }
 0x112   : > { %p4884_p10 = pnand %p4882_p4, %p6252_p8  ;;  %p4891_p9 = por %p4890_p5, %p4889_p0 }
 0x114   : > { %p4885_p3 = pneg %p4884_p10 }
 0x116   : > { %p4892_p1 = pnand %p4891_p9, %p4885_p3 }
 0x118   : > { %4895 = shalt.err (!%p4892_p1)
}
 0x119   : > { %p6253_p6 = scmp.ne.s32.totalorder %s6231_s4, 0  ;;  %s4896_s14 = scalar_lea.hbm %s6159_s7, 384 }
 0x11a   : > { %p4897_p7 = scmp.ne.s32.totalorder %s6159_s7, %s4896_s14  ;;  %p4903_p1 = scmp.lt.u32.totalorder %s4896_s14, %s6159_s7 }
 0x11b   : > { %4155 = dma.hbm_to_vmem [thread:$0]  (!%p6253_p6), %s6251_s5, 32, %s552_s20, [#allocation9]  }
 0x11c   : > { %p4899_p11 = pnand %p4897_p7, %p6252_p8 }
 0x11e   : > { %p4900_p12 = pneg %p4899_p11 }
 0x120   : > { %p4905_p2 = pnand %p4903_p1, %p4900_p12 }
 0x122   : > { %4908 = shalt.err (!%p4905_p2)
}
 0x123   : > { %s4909_s20 = scalar_lea.vmem %s5633_s12, 384  ;;  %p4917_p0 = scmp.lt.s32.totalorder %s5633_s12, %s5633_s12 }
 0x124   : > { %p4910_p4 = scmp.ne.s32.totalorder %s5633_s12, %s4909_s20  ;;  %p4918_p5 = scmp.lt.s32.totalorder %s4909_s20, %s4909_s20 }
 0x126   : > { %p4912_p10 = pnand %p4910_p4, %p6252_p8  ;;  %p4919_p9 = por %p4918_p5, %p4917_p0 }
 0x128   : > { %p4913_p3 = pneg %p4912_p10 }
 0x12a   : > { %p4920_p7 = pnand %p4919_p9, %p4913_p3 }
 0x12c   : > { %4923 = shalt.err (!%p4920_p7)
}
 0x12d   : > { %s6254_s6 = smov 8   ;;  %s6255_s19 = smov 128  }
 0x12e   : > { %4161 = dma.hbm_to_vmem [thread:$0]  (!%p6253_p6), %s6159_s7, 384, %s5633_s12, [#allocation12], %s6255_s19, %s6255_s19, %s6254_s6  }
 0x12f   : > { %s5237_s23 = smov [#allocation16]   ;;  %s5238_s18 = smov [#allocation19]  }
 0x130   : > { %s598_s17 = sshll.u32 %s5237_s23, 4  ;;  %s624_s14 = sshll.u32 %s5238_s18, 4  ;;  %s599_s17 = int_to_ptr.vmem [resolvable:$true] %s598_s17  ;;  %s5679_s14 = int_to_ptr.vmem [resolvable:$true] %s624_s14 }
 0x131   : > { %s4924_s21 = scalar_lea.hbm %s6161_s9, 12288 }
 0x132   : > { %p4925_p11 = scmp.ne.s32.totalorder %s6161_s9, %s4924_s21  ;;  %p4931_p2 = scmp.lt.u32.totalorder %s4924_s21, %s6161_s9 }
 0x134   : > { %p4927_p12 = pnand %p4925_p11, %p6252_p8 }
 0x136   : > { %p4928_p1 = pneg %p4927_p12 }
 0x138   : > { %p4933_p4 = pnand %p4931_p2, %p4928_p1 }
 0x13a   : > { %4936 = shalt.err (!%p4933_p4)
}
 0x13b   : > { %s4937_s1 = scalar_lea.vmem %s599_s17, 12288  ;;  %p4945_p5 = scmp.lt.s32.totalorder %s599_s17, %s599_s17 }
 0x13c   : > { %p4938_p10 = scmp.ne.s32.totalorder %s599_s17, %s4937_s1  ;;  %p4946_p9 = scmp.lt.s32.totalorder %s4937_s1, %s4937_s1 }
 0x13e   : > { %p4940_p3 = pnand %p4938_p10, %p6252_p8  ;;  %p4947_p7 = por %p4946_p9, %p4945_p5 }
 0x140   : > { %p4941_p0 = pneg %p4940_p3 }
 0x142   : > { %p4948_p13 = pnand %p4947_p7, %p4941_p0 }
 0x144   : > { %4951 = shalt.err (!%p4948_p13)
}
 0x145   : > { %4167 = dma.hbm_to_vmem [thread:$0]  (!%p6253_p6), %s6161_s9, 12288, %s599_s17, [#allocation15], %s6255_s19, %s6255_s19, %s6254_s6  }
 0x146   : > { %s4952_s21 = scalar_lea.hbm %s6163_s11, 12288 }
 0x147   : > { %p4953_p11 = scmp.ne.s32.totalorder %s6163_s11, %s4952_s21  ;;  %p4959_p1 = scmp.lt.u32.totalorder %s4952_s21, %s6163_s11 }
 0x149   : > { %p4955_p13 = pnand %p4953_p11, %p6252_p8 }
 0x14b   : > { %p4956_p12 = pneg %p4955_p13 }
 0x14d   : > { %p4961_p2 = pnand %p4959_p1, %p4956_p12 }
 0x14f   : > { %4964 = shalt.err (!%p4961_p2)
}
 0x150   : > { %s4965_s17 = scalar_lea.vmem %s5679_s14, 12288  ;;  %p4973_p0 = scmp.lt.s32.totalorder %s5679_s14, %s5679_s14 }
 0x151   : > { %p4966_p4 = scmp.ne.s32.totalorder %s5679_s14, %s4965_s17  ;;  %p4974_p5 = scmp.lt.s32.totalorder %s4965_s17, %s4965_s17 }
 0x153   : > { %p4968_p10 = pnand %p4966_p4, %p6252_p8  ;;  %p4975_p9 = por %p4974_p5, %p4973_p0 }
 0x155   : > { %p4969_p3 = pneg %p4968_p10 }
 0x157   : > { %p4976_p7 = pnand %p4975_p9, %p4969_p3 }
 0x159   : > { %4979 = shalt.err (!%p4976_p7)
}
 0x15a   : > { %4173 = dma.hbm_to_vmem [thread:$0]  (!%p6253_p6), %s6163_s11, 12288, %s5679_s14, [#allocation18], %s6255_s19, %s6255_s19, %s6254_s6  }
 0x15b   : > { %s5239_s18 = smov [#allocation22]   ;;  %s5240_s0 = smov [#allocation25]  }
 0x15c   : > { %s651_s10 = sshll.u32 %s5239_s18, 4  ;;  %s675_s21 = sshll.u32 %s5240_s0, 4  ;;  %s652_s10 = int_to_ptr.vmem [resolvable:$true] %s651_s10  ;;  %s5728_s21 = int_to_ptr.vmem [resolvable:$true] %s675_s21 }
 0x15d   : > { %s6256_s15 = sld [smem:[#allocation55_spill]] }
 0x163   : > { %s4980_s12 = scalar_lea.hbm %s6256_s15, 128 }
 0x164   : > { %p4981_p11 = scmp.ne.s32.totalorder %s6256_s15, %s4980_s12  ;;  %p4987_p1 = scmp.lt.u32.totalorder %s4980_s12, %s6256_s15 }
 0x166   : > { %p4983_p13 = pnand %p4981_p11, %p6252_p8 }
 0x168   : > { %p4984_p12 = pneg %p4983_p13 }
 0x16a   : > { %p4989_p2 = pnand %p4987_p1, %p4984_p12 }
 0x16c   : > { %4992 = shalt.err (!%p4989_p2)
}
 0x16d   : > { %s4993_s19 = scalar_lea.vmem %s652_s10, 128  ;;  %p5001_p0 = scmp.lt.s32.totalorder %s652_s10, %s652_s10 }
 0x16e   : > { %p4994_p4 = scmp.ne.s32.totalorder %s652_s10, %s4993_s19  ;;  %p5002_p5 = scmp.lt.s32.totalorder %s4993_s19, %s4993_s19 }
 0x170   : > { %p4996_p10 = pnand %p4994_p4, %p6252_p8  ;;  %p5003_p9 = por %p5002_p5, %p5001_p0 }
 0x172   : > { %p4997_p3 = pneg %p4996_p10 }
 0x174   : > { %p5004_p7 = pnand %p5003_p9, %p4997_p3 }
 0x176   : > { %5007 = shalt.err (!%p5004_p7)
}
 0x177   : > { %4179 = dma.hbm_to_vmem [thread:$0]  (!%p6253_p6), %s6256_s15, 128, %s652_s10, [#allocation21]  }
 0x178   : > { %s6257_s0 = sld [smem:[#allocation58_spill]] }
 0x17e   : > { %s5008_s25 = scalar_lea.hbm %s6257_s0, 1024 }
 0x17f   : > { %p5009_p11 = scmp.ne.s32.totalorder %s6257_s0, %s5008_s25  ;;  %p5015_p1 = scmp.lt.u32.totalorder %s5008_s25, %s6257_s0 }
 0x181   : > { %p5011_p13 = pnand %p5009_p11, %p6252_p8 }
 0x183   : > { %p5012_p12 = pneg %p5011_p13 }
 0x185   : > { %p5017_p2 = pnand %p5015_p1, %p5012_p12 }
 0x187   : > { %5020 = shalt.err (!%p5017_p2)
}
 0x188   : > { %s5021_s10 = scalar_lea.vmem %s5728_s21, 1024  ;;  %p5029_p0 = scmp.lt.s32.totalorder %s5728_s21, %s5728_s21 }
 0x189   : > { %p5022_p4 = scmp.ne.s32.totalorder %s5728_s21, %s5021_s10  ;;  %p5030_p5 = scmp.lt.s32.totalorder %s5021_s10, %s5021_s10 }
 0x18b   : > { %p5024_p10 = pnand %p5022_p4, %p6252_p8  ;;  %p5031_p9 = por %p5030_p5, %p5029_p0 }
 0x18d   : > { %p5025_p3 = pneg %p5024_p10 }
 0x18f   : > { %p5032_p7 = pnand %p5031_p9, %p5025_p3 }
 0x191   : > { %5035 = shalt.err (!%p5032_p7)
}
 0x192   : > { %s5241_s6 = smov 64   ;;  %s5242_s19 = smov 4  }
 0x193   : > { %4185 = dma.hbm_to_vmem [thread:$0]  (!%p6253_p6), %s6257_s0, 1024, %s5728_s21, [#allocation24], %s5241_s6, %s5241_s6, %s5242_s19  }
 0x194   : > { %s3685_s14 = sshll.u32 %s5568_s29, 2  ;;  %s3686_s23 = sshll.u32 %s5222_s24, 6 }
 0x195   : > { %s6258_s20 = sld [smem:[#allocation45_spill]]  ;;  %s699_s17 = scalar_lea.vmem [#allocation2], %s3685_s14 }
 0x196   : > { %s706_s1 = sshll.u32 %s699_s17, 4  ;;  %s6259_s4 = sshll.u32 %s5568_s29, 3  ;;  %s5778_s1 = int_to_ptr.vmem [resolvable:$true] %s706_s1 }
 0x197   : > { %s5782_s10 = scalar_lea.vmem [#allocation7], %s6259_s4  ;;  %s696_s6 = scalar_lea.sflag [#allocation3], %s5568_s29 }
 0x198   : > { %s750_s21 = sshll.u32 %s5782_s10, 4  ;;  %p6260_p6 = scmp.ne.s32.totalorder %s6248_s13, 0  ;;  %s751_s21 = int_to_ptr.vmem [resolvable:$true] %s750_s21 }
 0x19b   : > { %s5776_s12 = scalar_lea.hbm %s6258_s20, %s3686_s23  ;;  %s5041_s23 = scalar_lea.hbm %s6258_s20, 128 }
 0x19c   : > { %s5036_s19 = scalar_lea.hbm %s5776_s12, 64  ;;  %p5042_p12 = scmp.lt.u32.totalorder %s5776_s12, %s6258_s20 }
 0x19d   : > { %p5037_p8 = scmp.ne.s32.totalorder %s5776_s12, %s5036_s19  ;;  %p5043_p1 = scmp.lt.u32.totalorder %s5041_s23, %s5036_s19 }
 0x19e   : > { %p5045_p4 = scmp.lt.u32.totalorder %s5036_s19, %s5776_s12 }
 0x19f   : > { %p5039_p11 = pnand %p5037_p8, %p6260_p6  ;;  %p5044_p2 = por %p5043_p1, %p5042_p12 }
 0x1a1   : > { %p5040_p13 = pneg %p5039_p11  ;;  %p5046_p10 = por %p5045_p4, %p5044_p2 }
 0x1a3   : > { %p5047_p3 = pnand %p5046_p10, %p5040_p13 }
 0x1a5   : > { %5050 = shalt.err (!%p5047_p3)
}
 0x1a6   : > { %s5051_s29 = scalar_lea.vmem %s5778_s1, 64  ;;  %s5243_s25 = smov [#allocation2]  }
 0x1a7   : > { %p5052_p0 = scmp.ne.s32.totalorder %s5778_s1, %s5051_s29  ;;  %s5056_s17 = sshll.u32 %s5243_s25, 4  ;;  %s5057_s17 = int_to_ptr.vmem [resolvable:$false] %s5056_s17 }
 0x1a8   : > { %s5058_s4 = scalar_lea.vmem %s5057_s17, 128  ;;  %p5059_p7 = scmp.lt.s32.totalorder %s5778_s1, %s5057_s17 }
 0x1a9   : > { %p5054_p5 = pnand %p5052_p0, %p6260_p6  ;;  %p5060_p8 = scmp.lt.s32.totalorder %s5058_s4, %s5051_s29 }
 0x1ab   : > { %p5055_p9 = pneg %p5054_p5  ;;  %p5061_p11 = por %p5060_p8, %p5059_p7 }
 0x1ad   : > { %p5062_p12 = pnand %p5061_p11, %p5055_p9 }
 0x1af   : > { %5065 = shalt.err (!%p5062_p12)
}
 0x1b0   : > { %p6261_p13 = scmp.ne.s32.totalorder %s6246_s16, 0  ;;  %s5066_s19 = scalar_lea.hbm %s5631_s26, 128 }
 0x1b1   : > { %p5067_p1 = scmp.ne.s32.totalorder %s5631_s26, %s5066_s19  ;;  %s5071_s23 = scalar_lea.hbm %s6250_s2, 256 }
 0x1b2   : > { %4189 = dma.hbm_to_vmem [thread:$0]  (!%p6261_p13), %s5776_s12, 64, %s5778_s1, %s696_s6  }
 0x1b3   : > { %p5069_p2 = pnand %p5067_p1, %p6260_p6  ;;  %p5072_p10 = scmp.lt.u32.totalorder %s5631_s26, %s6250_s2 }
 0x1b4   : > { %p5073_p3 = scmp.lt.u32.totalorder %s5071_s23, %s5066_s19  ;;  %p5075_p5 = scmp.lt.u32.totalorder %s5066_s19, %s5631_s26 }
 0x1b5   : > { %p5070_p4 = pneg %p5069_p2 }
 0x1b6   : > { %p5074_p0 = por %p5073_p3, %p5072_p10 }
 0x1b8   : > { %p5076_p9 = por %p5075_p5, %p5074_p0 }
 0x1ba   : > { %p5077_p7 = pnand %p5076_p9, %p5070_p4 }
 0x1bc   : > { %5080 = shalt.err (!%p5077_p7)
}
 0x1bd   : > { %s5081_s12 = scalar_lea.vmem %s751_s21, 128  ;;  %s5244_s1 = smov [#allocation7]  }
 0x1be   : > { %p5082_p8 = scmp.ne.s32.totalorder %s751_s21, %s5081_s12  ;;  %s5086_s10 = sshll.u32 %s5244_s1, 4  ;;  %s5087_s10 = int_to_ptr.vmem [resolvable:$false] %s5086_s10 }
 0x1bf   : > { %s5088_s6 = scalar_lea.vmem %s5087_s10, 256  ;;  %p5089_p1 = scmp.lt.s32.totalorder %s751_s21, %s5087_s10 }
 0x1c0   : > { %p5084_p11 = pnand %p5082_p8, %p6260_p6  ;;  %p5090_p2 = scmp.lt.s32.totalorder %s5088_s6, %s5081_s12 }
 0x1c2   : > { %p5085_p12 = pneg %p5084_p11  ;;  %p5091_p13 = por %p5090_p2, %p5089_p1 }
 0x1c4   : > { %p5092_p3 = pnand %p5091_p13, %p5085_p12 }
 0x1c6   : > { %5095 = shalt.err (!%p5092_p3)
}
 0x1c7   : > { %p6262_p10 = scmp.ne.s32.totalorder %s6246_s16, 0  ;;  %s6263_s29 = sld [smem:[#allocation41_spill]] }
 0x1c9   : > { %4195 = dma.hbm_to_vmem [thread:$0]  (!%p6262_p10), %s5631_s26, 128, %s751_s21, %s5596_s8  }
 0x1cd   : > { %p6264_p4 = scmp.ne.s32.totalorder %s6263_s29, 0 }
 0x1ce   : > { %s5830_s13 = sand.u32 (!%p6264_p4), 1, %s5214_s22   ;;  %p6265_p6 = scmp.ne.s32.totalorder (!%p6264_p4), %s6242_s28, 0 }
 0x1cf   : > { %759 = sbr.rel (%p6264_p4) target bundleno = 3188 (0xc74), region = 96  ;;  %s3693_s25 = sshll.u32 (!%p6264_p4), %s5830_s13, 2 }
 0x1d0   : > { %s762_s17 = scalar_lea.sflag (!%p6264_p4), [#allocation3], %s5830_s13  ;;  %s5834_s4 = scalar_lea.vmem (!%p6264_p4), [#allocation2], %s3693_s25 }
 0x1d6   : > { %5169 = dma.done.wait (%p6265_p6), %s762_s17, 64  }
 0x1d7   : > { %5171 = vsyncadd (%p6265_p6), %s762_s17, 4294967232  ;;  %s770_s8 = sand.u32 1, %s5377_s3   ;;  %s5842_s16 = sshll.u32 %s5830_s13, 3 }
 0x1d8   : > { %s771_s26 = scalar_lea.sflag [#allocation6], %s770_s8  ;;  %s774_s21 = scalar_lea.vmem [#allocation5], %s5842_s16 }
 0x1d9   : > { %5173 = dma.done.wait (%p6265_p6), %s771_s26, 256  }
 0x1da   : > { %5175 = vsyncadd (%p6265_p6), %s771_s26, 4294967040  ;;  %s783_s19 = scalar_lea.vmem [#allocation7], %s5842_s16  ;;  %p6266_p13 = scmp.eq.s32.totalorder %s5377_s3, 0 }
 0x1dc   : > { %5177 = dma.done.wait (%p6266_p13), [#allocation9], 1056   ;;  %p6267_p0 = pmov %p6266_p13 }
 0x1de   : > { %5179 = vsyncadd (%p6267_p0), [#allocation9], 4294966240  ;;  %p6268_p5 = pmov %p6267_p0 }
 0x1df   : > { %p6269_p9 = pmov %p6267_p0 }
 0x1e0   : > { %5181 = dma.done.wait (%p6268_p5), [#allocation12], 4480  }
 0x1e1   : > { %5183 = vsyncadd (%p6269_p9), [#allocation12], 4294962816  ;;  %p6270_p7 = pmov %p6267_p0 }
 0x1e2   : > { %p6271_p8 = pmov %p6267_p0 }
 0x1e3   : > { %5185 = dma.done.wait (%p6270_p7), [#allocation15], 12320  }
 0x1e4   : > { %5187 = vsyncadd (%p6271_p8), [#allocation15], 4294954976  ;;  %p6272_p11 = pmov %p6267_p0 }
 0x1e5   : > { %p6273_p12 = pmov %p6267_p0 }
 0x1e6   : > { %5189 = dma.done.wait (%p6272_p11), [#allocation18], 12384  }
 0x1e7   : > { %5191 = vsyncadd (%p6273_p12), [#allocation18], 4294954912  ;;  %p6274_p1 = pmov %p6267_p0 }
 0x1e8   : > { %p6275_p2 = pmov %p6267_p0 }
 0x1e9   : > { %5193 = dma.done.wait (%p6274_p1), [#allocation21], 224  }
 0x1ea   : > { %5195 = vsyncadd (%p6275_p2), [#allocation21], 4294967072  ;;  %p6276_p3 = pmov %p6267_p0 }
 0x1eb   : > { %p6277_p10 = pmov %p6267_p0 }
 0x1ec   : > { %5197 = dma.done.wait (%p6276_p3), [#allocation24], 1040  }
 0x1ed   : > { %5199 = vsyncadd (%p6277_p10), [#allocation24], 4294966256  ;;  %v5245_v0 = vmov 0   ;;  %v4283_v1 = vld [vmem:[#allocation8 + $0x4] ss:$8 sps:$4 sm:$0xff]   ;;  %v1057_v9 = vld [vmem:[#allocation13 + $0x10] sm:$0xff] }
 0x1ee   : > { %1009 = vmatprep.mubr.bf16.mxu0 %v5245_v0  ;;  %1117 = vmatprep.mubr.bf16.mxu1 %v5245_v0  ;;  %v4285_v2 = vld [vmem:[#allocation8] ss:$8 sps:$4 sm:$0xff]   ;;  %v4286_v3 = vld [vmem:[#allocation8 + $0x14] ss:$8 sps:$4 sm:$0xff]   ;;  %v4288_v4 = vld [vmem:[#allocation8 + $0x10] ss:$8 sps:$4 sm:$0xff]   ;;  %v3723_v11 = vcombine.high %v1057_v9, %v1057_v9  ;;  %v3722_v12 = vcombine.low %v1057_v9, %v1057_v9 }
 0x1ef   : > { %977 = vmatprep.subr.bf16.mxu0 %v4283_v1  ;;  %v4289_v5 = vld [vmem:[#allocation8 + $0x24] ss:$8 sps:$4 sm:$0xff]   ;;  %v4291_v8 = vld [vmem:[#allocation8 + $0x20] ss:$8 sps:$4 sm:$0xff]   ;;  %vm1078_vm0 = vcmask 1043456   ;;  %vm1074_vm1 = vcmask 195584  }
 0x1f0   : > { %978 = vmatpush1.bf16.msra.mxu0 %v4285_v2  ;;  %v4295_v6 = vld [vmem:[#allocation13 + $0x4] ss:$8 sps:$4 sm:$0xff]   ;;  %v4297_v7 = vld [vmem:[#allocation13] ss:$8 sps:$4 sm:$0xff]   ;;  %v4292_v10 = vld [vmem:[#allocation8 + $0x34] ss:$8 sps:$4 sm:$0xff]  }
 0x1f1   : > { %979 = vmatprep.subr.bf16.mxu0 %v4286_v3  ;;  %1085 = vmatprep.subr.bf16.mxu1 %v4295_v6  ;;  %v1054_v13 = vld [vmem:[%s774_s21] sm:$0xff]  ;;  %v1080_v14 = vsel %vm1078_vm0, %v3722_v12, 0  ;;  %v4294_v16 = vld [vmem:[#allocation8 + $0x30] ss:$8 sps:$4 sm:$0xff]   ;;  %vm973_vm2 = vcmask 523264   ;;  %s6278_s27 = sld [smem:[#allocation56_spill]] }
 0x1f2   : > { %1086 = vmatpush1.bf16.msra.mxu1 %v4297_v7  ;;  %v4302_v15 = vld [vmem:[#allocation11 + $0x4] ss:$8 sps:$4 sm:$0xff]   ;;  %v1058_v17 = vpack.c.bf16 %v1054_v13, %v1054_v13  ;;  %v4300_v18 = vld [vmem:[#allocation11] ss:$8 sps:$4 sm:$0xff]   ;;  %v4305_v19 = vld [vmem:[#allocation11 + $0x14] ss:$8 sps:$4 sm:$0xff]  }
 0x1f3   : > { %3724 = vmatprep.subr.msk.bf16.mxu1 %vm1078_vm0, %v3723_v11  ;;  %v912_v20 = vld [vmem:[%s5834_s4] sm:$0xf]  ;;  %v4308_v22 = vld [vmem:[#allocation11 + $0x24] ss:$8 sps:$4 sm:$0xff]   ;;  %v4306_v23 = vld [vmem:[#allocation11 + $0x20] ss:$8 sps:$4 sm:$0xff]  }
 0x1f4   : > { %980 = vmatpush1.bf16.msra.mxu0 %v4288_v4  ;;  %v4303_v21 = vld [vmem:[#allocation11 + $0x10] ss:$8 sps:$4 sm:$0xff]   ;;  %v4311_v24 = vld [vmem:[#allocation11 + $0x34] ss:$8 sps:$4 sm:$0xff]   ;;  %v4314_v26 = vld [vmem:[#allocation11 + $0x44] ss:$8 sps:$4 sm:$0xff]  }
 0x1f5   : > { %981 = vmatprep.subr.bf16.mxu0 %v4289_v5  ;;  %v4309_v25 = vld [vmem:[#allocation11 + $0x30] ss:$8 sps:$4 sm:$0xff]   ;;  %v4312_v27 = vld [vmem:[#allocation11 + $0x40] ss:$8 sps:$4 sm:$0xff]   ;;  %v4317_v28 = vld [vmem:[#allocation11 + $0x54] ss:$8 sps:$4 sm:$0xff]  }
 0x1f6   : > { %1088 = vmatpush1.bf16.msra.mxu1 %v1080_v14  ;;  %v4315_v29 = vld [vmem:[#allocation11 + $0x50] ss:$8 sps:$4 sm:$0xff]   ;;  %v4320_v30 = vld [vmem:[#allocation11 + $0x64] ss:$8 sps:$4 sm:$0xff]   ;;  %v4318_v31 = vld [vmem:[#allocation11 + $0x60] ss:$8 sps:$4 sm:$0xff]  }
 0x1f7   : > { %1286 = vmatprep.subr.bf16.mxu1 %v4302_v15  ;;  %v4323_v32 = vld [vmem:[#allocation11 + $0x74] ss:$8 sps:$4 sm:$0xff]   ;;  %v4321_v33 = vld [vmem:[#allocation11 + $0x70] ss:$8 sps:$4 sm:$0xff]   ;;  %v4326_v34 = vld [vmem:[#allocation11 + $0x84] ss:$8 sps:$4 sm:$0xff]   ;;  %v923_v15 = vlaneseq }
 0x1f8   : > { %982 = vmatpush1.bf16.msra.mxu0 %v4291_v8  ;;  %v4324_v35 = vld [vmem:[#allocation11 + $0x80] ss:$8 sps:$4 sm:$0xff]   ;;  %v4329_v36 = vld [vmem:[#allocation11 + $0x94] ss:$8 sps:$4 sm:$0xff]   ;;  %v4327_v37 = vld [vmem:[#allocation11 + $0x90] ss:$8 sps:$4 sm:$0xff]  }
 0x1f9   : > { %983 = vmatprep.subr.bf16.mxu0 %v4292_v10  ;;  %3725 = vmatmul.mubr.msk.bf16.vlgmr.msra.gmra.mrb[0].mxu1 %vm1074_vm1, %v1058_v17  ;;  %v4332_v38 = vld [vmem:[#allocation11 + $0xa4] ss:$8 sps:$4 sm:$0xff]   ;;  %v4330_v39 = vld [vmem:[#allocation11 + $0xa0] ss:$8 sps:$4 sm:$0xff]   ;;  %v4335_v40 = vld [vmem:[#allocation11 + $0xb4] ss:$8 sps:$4 sm:$0xff]  }
 0x1fa   : > { %1287 = vmatpush1.bf16.msra.mxu1 %v4300_v18  ;;  %v4333_v41 = vld [vmem:[#allocation11 + $0xb0] ss:$8 sps:$4 sm:$0xff]   ;;  %v4338_v42 = vld [vmem:[#allocation11 + $0xc4] ss:$8 sps:$4 sm:$0xff]   ;;  %v4336_v43 = vld [vmem:[#allocation11 + $0xc0] ss:$8 sps:$4 sm:$0xff]  }
 0x1fb   : > { %1288 = vmatprep.subr.bf16.mxu1 %v4305_v19  ;;  %v4341_v44 = vld [vmem:[#allocation11 + $0xd4] ss:$8 sps:$4 sm:$0xff]   ;;  %v4339_v45 = vld [vmem:[#allocation11 + $0xd0] ss:$8 sps:$4 sm:$0xff]   ;;  %v4344_v46 = vld [vmem:[#allocation11 + $0xe4] ss:$8 sps:$4 sm:$0xff]  }
 0x1fc   : > { %984 = vmatpush1.bf16.msra.mxu0 %v4294_v16  ;;  %v4342_v47 = vld [vmem:[#allocation11 + $0xe0] ss:$8 sps:$4 sm:$0xff]   ;;  %v4347_v48 = vld [vmem:[#allocation11 + $0xf4] ss:$8 sps:$4 sm:$0xff]   ;;  %v4345_v49 = vld [vmem:[#allocation11 + $0xf0] ss:$8 sps:$4 sm:$0xff]  }
 0x1fd   : > { %v4348_v50 = vld [vmem:[#allocation16] ss:$8 sps:$4 sm:$0xff]   ;;  %v4350_v51 = vld [vmem:[#allocation16 + $0x4] ss:$8 sps:$4 sm:$0xff]   ;;  %v4353_v52 = vld [vmem:[#allocation16 + $0x14] ss:$8 sps:$4 sm:$0xff]  }
 0x1fe   : > { %1289 = vmatpush1.bf16.msra.mxu1 %v4303_v21  ;;  %1552 = vmatprep.subr.bf16.mxu0 %v4350_v51  ;;  %v4351_v53 = vld [vmem:[#allocation16 + $0x10] ss:$8 sps:$4 sm:$0xff]   ;;  %v4356_v54 = vld [vmem:[#allocation16 + $0x24] ss:$8 sps:$4 sm:$0xff]   ;;  %v4354_v55 = vld [vmem:[#allocation16 + $0x20] ss:$8 sps:$4 sm:$0xff]  }
 0x1ff   : > { %3719 = vmatmul.mubr.msk.bf16.vlgmr.msra.gmra.mrb[0].mxu0 %vm973_vm2, %v912_v20  ;;  %1290 = vmatprep.subr.bf16.mxu1 %v4308_v22  ;;  %v4359_v56 = vld [vmem:[#allocation16 + $0x34] ss:$8 sps:$4 sm:$0xff]   ;;  %v4357_v57 = vld [vmem:[#allocation16 + $0x30] ss:$8 sps:$4 sm:$0xff]   ;;  %v4362_v58 = vld [vmem:[#allocation16 + $0x44] ss:$8 sps:$4 sm:$0xff]  }
 0x200   : > { %1553 = vmatpush1.bf16.msra.mxu0 %v4348_v50  ;;  %v4360_v59 = vld [vmem:[#allocation16 + $0x40] ss:$8 sps:$4 sm:$0xff]   ;;  %v4365_v60 = vld [vmem:[#allocation16 + $0x54] ss:$8 sps:$4 sm:$0xff]   ;;  %v4363_v61 = vld [vmem:[#allocation16 + $0x50] ss:$8 sps:$4 sm:$0xff]  }
 0x201   : > { %1554 = vmatprep.subr.bf16.mxu0 %v4353_v52  ;;  %v4368_v62 = vld [vmem:[#allocation16 + $0x64] ss:$8 sps:$4 sm:$0xff]   ;;  %v4366_v63 = vld [vmem:[#allocation16 + $0x60] ss:$8 sps:$4 sm:$0xff]   ;;  %v4371_v1 = vld [vmem:[#allocation16 + $0x74] ss:$8 sps:$4 sm:$0xff]  }
 0x202   : > { %1291 = vmatpush1.bf16.msra.mxu1 %v4306_v23  ;;  %v4369_v2 = vld [vmem:[#allocation16 + $0x70] ss:$8 sps:$4 sm:$0xff]   ;;  %v4374_v3 = vld [vmem:[#allocation16 + $0x84] ss:$8 sps:$4 sm:$0xff]   ;;  %v4372_v4 = vld [vmem:[#allocation16 + $0x80] ss:$8 sps:$4 sm:$0xff]  }
 0x203   : > { %1292 = vmatprep.subr.bf16.mxu1 %v4311_v24  ;;  %v4377_v5 = vld [vmem:[#allocation16 + $0x94] ss:$8 sps:$4 sm:$0xff]   ;;  %v4375_v6 = vld [vmem:[#allocation16 + $0x90] ss:$8 sps:$4 sm:$0xff]   ;;  %v4380_v7 = vld [vmem:[#allocation16 + $0xa4] ss:$8 sps:$4 sm:$0xff]  }
 0x204   : > { %1555 = vmatpush1.bf16.msra.mxu0 %v4351_v53  ;;  %v4378_v8 = vld [vmem:[#allocation16 + $0xa0] ss:$8 sps:$4 sm:$0xff]   ;;  %v4383_v9 = vld [vmem:[#allocation16 + $0xb4] ss:$8 sps:$4 sm:$0xff]   ;;  %v4381_v10 = vld [vmem:[#allocation16 + $0xb0] ss:$8 sps:$4 sm:$0xff]  }
 0x205   : > { %1556 = vmatprep.subr.bf16.mxu0 %v4356_v54  ;;  %v4386_v11 = vld [vmem:[#allocation16 + $0xc4] ss:$8 sps:$4 sm:$0xff]   ;;  %v4384_v12 = vld [vmem:[#allocation16 + $0xc0] ss:$8 sps:$4 sm:$0xff]   ;;  %v4389_v13 = vld [vmem:[#allocation16 + $0xd4] ss:$8 sps:$4 sm:$0xff]  }
 0x206   : > { %1293 = vmatpush1.bf16.msra.mxu1 %v4309_v25  ;;  %v4387_v14 = vld [vmem:[#allocation16 + $0xd0] ss:$8 sps:$4 sm:$0xff]   ;;  %v924_v16 = vshrl.u32 %v923_v15, 7  ;;  %v921_v18 = vld [vmem:[#allocation10] sm:$0x3]  ;;  %vm5247_vm3 = vmmov 0  }
 0x207   : > { %1294 = vmatprep.subr.bf16.mxu1 %v4314_v26  ;;  %v4413_v50 = vld [vmem:[#allocation19 + $0x54] ss:$8 sps:$4 sm:$0xff]   ;;  %v4411_v51 = vld [vmem:[#allocation19 + $0x50] ss:$8 sps:$4 sm:$0xff]   ;;  %v4416_v52 = vld [vmem:[#allocation19 + $0x64] ss:$8 sps:$4 sm:$0xff]  }
 0x208   : > { %1557 = vmatpush1.bf16.msra.mxu0 %v4354_v55  ;;  %v5881_v17 = vsub.s32 0, %v924_v16  ;;  %v5883_v19 = vsub.s32 1, %v924_v16  ;;  %v4414_v53 = vld [vmem:[#allocation19 + $0x60] ss:$8 sps:$4 sm:$0xff]   ;;  %v4419_v54 = vld [vmem:[#allocation19 + $0x74] ss:$8 sps:$4 sm:$0xff]  }
 0x209   : > { %1558 = vmatprep.subr.bf16.mxu0 %v4359_v56  ;;  %v4417_v55 = vld [vmem:[#allocation19 + $0x70] ss:$8 sps:$4 sm:$0xff]   ;;  %v4422_v56 = vld [vmem:[#allocation19 + $0x84] ss:$8 sps:$4 sm:$0xff]   ;;  %s6279_s28 = sld [smem:[#allocation59_spill]]  ;;  %p907_p4 = scmp.lt.s32.totalorder %s5377_s3, 1 }
 0x20a   : > { %1295 = vmatpush1.bf16.msra.mxu1 %v4312_v27  ;;  %v926_v20 = vrot.slane %v921_v18, %v5881_v17  ;;  %v930_v21 = vrot.slane %v921_v18, %v5883_v19  ;;  %s6280_s18 = sld [smem:[#allocation46_spill]]  ;;  %s6281_s10 = sld [smem:[#allocation60_spill]]  ;;  %vm3258_vm7 = vcmask 64512  }
 0x20b   : > { %1296 = vmatprep.subr.bf16.mxu1 %v4317_v28  ;;  %s908_s21 = scalar_select %p907_p4, %s5377_s3, 1 }
 0x20c   : > { %1559 = vmatpush1.bf16.msra.mxu0 %v4357_v57  ;;  %v4420_v57 = vld [vmem:[#allocation19 + $0x80] ss:$8 sps:$4 sm:$0xff]   ;;  %s4002_s6 = sshll.u32 %s5377_s3, 7  ;;  %s899_s29 = scalar_lea.vmem [#allocation26], %s5842_s16 }
 0x20d   : > { %1560 = vmatprep.subr.bf16.mxu0 %v4362_v58  ;;  %v4425_v58 = vld [vmem:[#allocation19 + $0x94] ss:$8 sps:$4 sm:$0xff]   ;;  %s3386_s25 = sshll.u32 %s899_s29, 4  ;;  %s6282_s8 = sld [smem:[#allocation61_spill]]  ;;  %s6070_s25 = int_to_ptr.vmem [resolvable:$true] %s3386_s25 }
 0x20e   : > { %1297 = vmatpush1.bf16.msra.mxu1 %v4315_v29  ;;  %s3367_s5 = scalar_lea.sflag [#allocation4], %s5830_s13  ;;  %s5096_s23 = scalar_lea.vmem %s6070_s25, 128 }
 0x20f   : > { %1298 = vmatprep.subr.bf16.mxu1 %v4320_v30  ;;  %p5097_p6 = scmp.ne.s32.totalorder %s6070_s25, %s5096_s23  ;;  %p6283_p13 = scmp.ne.s32.totalorder %s6243_s30, 0 }
 0x210   : > { %1561 = vmatpush1.bf16.msra.mxu0 %v4360_v59  ;;  %v4423_v59 = vld [vmem:[#allocation19 + $0x90] ss:$8 sps:$4 sm:$0xff]  }
 0x211   : > { %1562 = vmatprep.subr.bf16.mxu0 %v4365_v60  ;;  %v4428_v60 = vld [vmem:[#allocation19 + $0xa4] ss:$8 sps:$4 sm:$0xff]   ;;  %p5098_p0 = pnand %p5097_p6, %p6283_p13 }
 0x212   : > { %1299 = vmatpush1.bf16.msra.mxu1 %v4318_v31 }
 0x213   : > { %1300 = vmatprep.subr.bf16.mxu1 %v4323_v32  ;;  %s6068_s26 = scalar_lea.hbm %s6282_s8, %s4002_s6  ;;  %p5099_p5 = pneg %p5098_p0 }
 0x214   : > { %1563 = vmatpush1.bf16.msra.mxu0 %v4363_v61  ;;  %v4426_v61 = vld [vmem:[#allocation19 + $0xa0] ss:$8 sps:$4 sm:$0xff]  }
 0x215   : > { %1564 = vmatprep.subr.bf16.mxu0 %v4368_v62  ;;  %v4431_v62 = vld [vmem:[#allocation19 + $0xb4] ss:$8 sps:$4 sm:$0xff]  }
 0x216   : > { %1301 = vmatpush1.bf16.msra.mxu1 %v4321_v33 }
 0x217   : > { %1302 = vmatprep.subr.bf16.mxu1 %v4326_v34 }
 0x218   : > { %1565 = vmatpush1.bf16.msra.mxu0 %v4366_v63  ;;  %v4429_v63 = vld [vmem:[#allocation19 + $0xb0] ss:$8 sps:$4 sm:$0xff]  }
 0x219   : > { %1566 = vmatprep.subr.bf16.mxu0 %v4371_v1  ;;  %v4434_v1 = vld [vmem:[#allocation19 + $0xc4] ss:$8 sps:$4 sm:$0xff]  }
 0x21a   : > { %1303 = vmatpush1.bf16.msra.mxu1 %v4324_v35 }
 0x21b   : > { %1304 = vmatprep.subr.bf16.mxu1 %v4329_v36  ;;  %v4392_v36 = vld [vmem:[#allocation16 + $0xe4] ss:$8 sps:$4 sm:$0xff]  }
 0x21c   : > { %1567 = vmatpush1.bf16.msra.mxu0 %v4369_v2  ;;  %v4432_v2 = vld [vmem:[#allocation19 + $0xc0] ss:$8 sps:$4 sm:$0xff]  }
 0x21d   : > { %1568 = vmatprep.subr.bf16.mxu0 %v4374_v3  ;;  %v4437_v3 = vld [vmem:[#allocation19 + $0xd4] ss:$8 sps:$4 sm:$0xff]  }
 0x21e   : > { %1305 = vmatpush1.bf16.msra.mxu1 %v4327_v37  ;;  %v4390_v37 = vld [vmem:[#allocation16 + $0xe0] ss:$8 sps:$4 sm:$0xff]  }
 0x21f   : > { %1306 = vmatprep.subr.bf16.mxu1 %v4332_v38  ;;  %v4395_v38 = vld [vmem:[#allocation16 + $0xf4] ss:$8 sps:$4 sm:$0xff]  }
 0x220   : > { %1569 = vmatpush1.bf16.msra.mxu0 %v4372_v4  ;;  %v4435_v4 = vld [vmem:[#allocation19 + $0xd0] ss:$8 sps:$4 sm:$0xff]  }
 0x221   : > { %1570 = vmatprep.subr.bf16.mxu0 %v4377_v5  ;;  %v1327_v5 = vld [vmem:[#allocation14] sm:$0x3] }
 0x222   : > { %1307 = vmatpush1.bf16.msra.mxu1 %v4330_v39  ;;  %v4393_v39 = vld [vmem:[#allocation16 + $0xf0] ss:$8 sps:$4 sm:$0xff]  }
 0x223   : > { %1308 = vmatprep.subr.bf16.mxu1 %v4335_v40  ;;  %v4396_v40 = vld [vmem:[#allocation19] ss:$8 sps:$4 sm:$0xff]  }
 0x224   : > { %1571 = vmatpush1.bf16.msra.mxu0 %v4375_v6  ;;  %v1341_v6 = vld [vmem:[%s783_s19] sm:$0xff]  ;;  %s3710_s19 = sshll.u32 %s908_s21, 2  ;;  %s906_s21 = scalar_lea.vmem [#allocation27], %s5842_s16 }
 0x225   : > { %1572 = vmatprep.subr.bf16.mxu0 %v4380_v7  ;;  %v1332_v7 = vrot.slane %v1327_v5, %v5881_v17  ;;  %s910_s14 = scalar_lea.vmem %s6280_s18, %s3710_s19  ;;  %s6075_s19 = sshll.u32 %s906_s21, 4  ;;  %s6108_s19 = int_to_ptr.vmem [resolvable:$true] %s6075_s19 }
 0x226   : > { %1309 = vmatpush1.bf16.msra.mxu1 %v4333_v41  ;;  %v4398_v41 = vld [vmem:[#allocation19 + $0x4] ss:$8 sps:$4 sm:$0xff]   ;;  %s5249_s18 = smov [#allocation26]  }
 0x227   : > { %1310 = vmatprep.subr.bf16.mxu1 %v4338_v42  ;;  %v4401_v42 = vld [vmem:[#allocation19 + $0x14] ss:$8 sps:$4 sm:$0xff]  }
 0x228   : > { %1573 = vmatpush1.bf16.msra.mxu0 %v4378_v8 }
 0x229   : > { %1574 = vmatprep.subr.bf16.mxu0 %v4383_v9  ;;  %v1336_v9 = vrot.slane %v1327_v5, %v5883_v19 }
 0x22a   : > { %1311 = vmatpush1.bf16.msra.mxu1 %v4336_v43  ;;  %v4399_v43 = vld [vmem:[#allocation19 + $0x10] ss:$8 sps:$4 sm:$0xff]  }
 0x22b   : > { %1312 = vmatprep.subr.bf16.mxu1 %v4341_v44  ;;  %v4404_v44 = vld [vmem:[#allocation19 + $0x24] ss:$8 sps:$4 sm:$0xff]  }
 0x22c   : > { %1575 = vmatpush1.bf16.msra.mxu0 %v4381_v10 }
 0x22d   : > { %1576 = vmatprep.subr.bf16.mxu0 %v4386_v11  ;;  %v1342_v11 = vunpack.c.l.bf16 %v1341_v6 }
 0x22e   : > { %1313 = vmatpush1.bf16.msra.mxu1 %v4339_v45  ;;  %v4402_v45 = vld [vmem:[#allocation19 + $0x20] ss:$8 sps:$4 sm:$0xff]  }
 0x22f   : > { %1314 = vmatprep.subr.bf16.mxu1 %v4344_v46  ;;  %v4407_v46 = vld [vmem:[#allocation19 + $0x34] ss:$8 sps:$4 sm:$0xff]  }
 0x230   : > { %1577 = vmatpush1.bf16.msra.mxu0 %v4384_v12 }
 0x231   : > { %1578 = vmatprep.subr.bf16.mxu0 %v4389_v13 }
 0x232   : > { %1315 = vmatpush1.bf16.msra.mxu1 %v4342_v47  ;;  %v4405_v47 = vld [vmem:[#allocation19 + $0x30] ss:$8 sps:$4 sm:$0xff]  }
 0x233   : > { %1316 = vmatprep.subr.bf16.mxu1 %v4347_v48  ;;  %v4410_v48 = vld [vmem:[#allocation19 + $0x44] ss:$8 sps:$4 sm:$0xff]  }
 0x234   : > { %1579 = vmatpush1.bf16.msra.mxu0 %v4387_v14  ;;  %v1343_v14 = vunpack.c.h.bf16 %v1341_v6 }
 0x235   : > { %1580 = vmatprep.subr.bf16.mxu0 %v4392_v36  ;;  %v4453_v36 = vld [vmem:[#allocation16 + $0x130] ss:$8 sps:$4 sm:$0xff]  }
 0x236   : > { %1317 = vmatpush1.bf16.msra.mxu1 %v4345_v49  ;;  %v4408_v49 = vld [vmem:[#allocation19 + $0x40] ss:$8 sps:$4 sm:$0xff]  }
 0x237   : > { %1801 = vmatprep.subr.bf16.mxu1 %v4398_v41  ;;  %v4464_v41 = vld [vmem:[#allocation16 + $0x164] ss:$8 sps:$4 sm:$0xff]  }
 0x238   : > { %1581 = vmatpush1.bf16.msra.mxu0 %v4390_v37  ;;  %v4458_v37 = vld [vmem:[#allocation16 + $0x144] ss:$8 sps:$4 sm:$0xff]  }
 0x239   : > { %1582 = vmatprep.subr.bf16.mxu0 %v4395_v38  ;;  %v4456_v38 = vld [vmem:[#allocation16 + $0x140] ss:$8 sps:$4 sm:$0xff]  }
 0x23c   : > { %1583 = vmatpush1.bf16.msra.mxu0 %v4393_v39  ;;  %v4461_v39 = vld [vmem:[#allocation16 + $0x154] ss:$8 sps:$4 sm:$0xff]  }
 0x2cc   : > { %v5887_v22 = vpop.f32.mrb[0].mxu1 }
 0x2cd   : > { %v5889_v23 = vpop.f32.mrb[1].mxu1 }
 0x2ce   : > { %v1123_v25 = vpop.f32.mrb[2].mxu1 }
 0x2cf   : > { %v1124_v28 = vpop.f32.mrb[3].mxu1 }
 0x2d0   : > { %v4441_v28 = vld [vmem:[#allocation19 + $0xf0] ss:$8 sps:$4 sm:$0xff]  }
 0x2d2   : > { %v1011_v24 = vpop.f32.mrb[0].mxu0 }
 0x2d3   : > { %v1012_v26 = vadd.f32 %v1011_v24, %v926_v20  ;;  %v1013_v27 = vpop.f32.mrb[1].mxu0 }
 0x2d4   : > { %v1014_v29 = vadd.f32 %v1013_v27, %v930_v21  ;;  %v1015_v30 = vpop.f32.mrb[2].mxu0  ;;  %v4438_v27 = vld [vmem:[#allocation19 + $0xe0] ss:$8 sps:$4 sm:$0xff]  }
 0x2d5   : > { %v1018_v31 = vmax.f32 %v1012_v26, 0.0  ;;  %v1016_v32 = vpop.f32.mrb[3].mxu0  ;;  %v4446_v30 = vld [vmem:[#allocation16 + $0x104] ss:$8 sps:$4 sm:$0xff]  }
 0x2d6   : > { %v1019_v33 = vmax.f32 %v1014_v29, 0.0  ;;  %v4444_v29 = vld [vmem:[#allocation16 + $0x100] ss:$8 sps:$4 sm:$0xff]   ;;  %2054 = vmatprep.subr.bf16.mxu0 %v4446_v30  ;;  %v4447_v32 = vld [vmem:[#allocation16 + $0x110] ss:$8 sps:$4 sm:$0xff]  }
 0x2d7   : > { %v1052_v35 = vpack.c.bf16 %v1018_v31, %v1018_v31  ;;  %v4449_v31 = vld [vmem:[#allocation16 + $0x114] ss:$8 sps:$4 sm:$0xff]  }
 0x2d8   : > { %v1053_v34 = vpack.c.bf16 %v1019_v33, %v1019_v33  ;;  %v4452_v33 = vld [vmem:[#allocation16 + $0x124] ss:$8 sps:$4 sm:$0xff]   ;;  %v4513_v30 = vld [vmem:[#allocation19 + $0x170] ss:$8 sps:$4 sm:$0xff]  }
 0x2da   : > { %1318 = vmatprep.mubr.bf16.mxu1 %v1053_v34  ;;  %v4450_v34 = vld [vmem:[#allocation16 + $0x120] ss:$8 sps:$4 sm:$0xff]  }
 0x2db   : > { %1319 = vmatmul.mubr.bf16.vlgmr.msra.gmra.mrb[4].mxu1 %v1052_v35  ;;  %v4455_v35 = vld [vmem:[#allocation16 + $0x134] ss:$8 sps:$4 sm:$0xff]  }
 0x2dc   : > { %1802 = vmatpush1.bf16.msra.mxu1 %v4396_v40  ;;  %v4459_v40 = vld [vmem:[#allocation16 + $0x150] ss:$8 sps:$4 sm:$0xff]  }
 0x2dd   : > { %1803 = vmatprep.subr.bf16.mxu1 %v4401_v42  ;;  %v4462_v42 = vld [vmem:[#allocation16 + $0x160] ss:$8 sps:$4 sm:$0xff]  }
 0x2e0   : > { %1804 = vmatpush1.bf16.msra.mxu1 %v4399_v43  ;;  %v4467_v43 = vld [vmem:[#allocation16 + $0x174] ss:$8 sps:$4 sm:$0xff]  }
 0x2e1   : > { %1805 = vmatprep.subr.bf16.mxu1 %v4404_v44  ;;  %v4465_v44 = vld [vmem:[#allocation16 + $0x170] ss:$8 sps:$4 sm:$0xff]  }
 0x2e4   : > { %1806 = vmatpush1.bf16.msra.mxu1 %v4402_v45  ;;  %v4470_v45 = vld [vmem:[#allocation16 + $0x184] ss:$8 sps:$4 sm:$0xff]  }
 0x2e5   : > { %1807 = vmatprep.subr.bf16.mxu1 %v4407_v46  ;;  %v4468_v46 = vld [vmem:[#allocation16 + $0x180] ss:$8 sps:$4 sm:$0xff]  }
 0x2e8   : > { %1808 = vmatpush1.bf16.msra.mxu1 %v4405_v47  ;;  %v4473_v47 = vld [vmem:[#allocation16 + $0x194] ss:$8 sps:$4 sm:$0xff]  }
 0x2e9   : > { %1809 = vmatprep.subr.bf16.mxu1 %v4410_v48  ;;  %v4471_v48 = vld [vmem:[#allocation16 + $0x190] ss:$8 sps:$4 sm:$0xff]  }
 0x2ec   : > { %1810 = vmatpush1.bf16.msra.mxu1 %v4408_v49  ;;  %v4476_v49 = vld [vmem:[#allocation16 + $0x1a4] ss:$8 sps:$4 sm:$0xff]  }
 0x2ed   : > { %1811 = vmatprep.subr.bf16.mxu1 %v4413_v50  ;;  %v4474_v50 = vld [vmem:[#allocation16 + $0x1a0] ss:$8 sps:$4 sm:$0xff]  }
 0x2f0   : > { %1812 = vmatpush1.bf16.msra.mxu1 %v4411_v51  ;;  %v4479_v51 = vld [vmem:[#allocation16 + $0x1b4] ss:$8 sps:$4 sm:$0xff]  }
 0x2f1   : > { %1813 = vmatprep.subr.bf16.mxu1 %v4416_v52  ;;  %v4477_v52 = vld [vmem:[#allocation16 + $0x1b0] ss:$8 sps:$4 sm:$0xff]  }
 0x2f4   : > { %1814 = vmatpush1.bf16.msra.mxu1 %v4414_v53  ;;  %v4482_v53 = vld [vmem:[#allocation16 + $0x1c4] ss:$8 sps:$4 sm:$0xff]  }
 0x2f5   : > { %1815 = vmatprep.subr.bf16.mxu1 %v4419_v54  ;;  %v4480_v54 = vld [vmem:[#allocation16 + $0x1c0] ss:$8 sps:$4 sm:$0xff]  }
 0x2f8   : > { %1816 = vmatpush1.bf16.msra.mxu1 %v4417_v55  ;;  %v4485_v55 = vld [vmem:[#allocation16 + $0x1d4] ss:$8 sps:$4 sm:$0xff]  }
 0x2f9   : > { %1817 = vmatprep.subr.bf16.mxu1 %v4422_v56  ;;  %v4483_v56 = vld [vmem:[#allocation16 + $0x1d0] ss:$8 sps:$4 sm:$0xff]  }
 0x2fc   : > { %1818 = vmatpush1.bf16.msra.mxu1 %v4420_v57  ;;  %v1380_v57 = vld [vmem:[#allocation17] sm:$0x3] }
 0x2fd   : > { %1819 = vmatprep.subr.bf16.mxu1 %v4425_v58  ;;  %v1385_v58 = vrot.slane %v1380_v57, %v5881_v17 }
 0x300   : > { %1820 = vmatpush1.bf16.msra.mxu1 %v4423_v59  ;;  %v1389_v59 = vrot.slane %v1380_v57, %v5883_v19 }
 0x301   : > { %1821 = vmatprep.subr.bf16.mxu1 %v4428_v60 }
 0x304   : > { %1822 = vmatpush1.bf16.msra.mxu1 %v4426_v61 }
 0x305   : > { %1823 = vmatprep.subr.bf16.mxu1 %v4431_v62 }
 0x308   : > { %1824 = vmatpush1.bf16.msra.mxu1 %v4429_v63 }
 0x309   : > { %1825 = vmatprep.subr.bf16.mxu1 %v4434_v1 }
 0x30c   : > { %1826 = vmatpush1.bf16.msra.mxu1 %v4432_v2 }
 0x30d   : > { %1827 = vmatprep.subr.bf16.mxu1 %v4437_v3 }
 0x310   : > { %1828 = vmatpush1.bf16.msra.mxu1 %v4435_v4 }
 0x3ae   : > { %v1320_v8 = vpop.f32.mrb[4].mxu1 }
 0x3af   : > { %v1321_v10 = vadd.f32 %v1320_v8, %v5887_v22  ;;  %v1322_v12 = vpop.f32.mrb[5].mxu1  ;;  %v4440_v22 = vld [vmem:[#allocation19 + $0xe4] ss:$8 sps:$4 sm:$0xff]  }
 0x3b0   : > { %v1323_v13 = vadd.f32 %v1322_v12, %v5889_v23  ;;  %v1324_v15 = vpop.f32.mrb[6].mxu1  ;;  %1829 = vmatprep.subr.bf16.mxu1 %v4440_v22  ;;  %v4443_v23 = vld [vmem:[#allocation19 + $0xf4] ss:$8 sps:$4 sm:$0xff]   ;;  %v4494_v12 = vld [vmem:[#allocation19 + $0x104] ss:$8 sps:$4 sm:$0xff]  }
 0x3b1   : > { %v1339_v16 = vadd.f32 %v1332_v7, %v1321_v10  ;;  %v1325_v18 = vpop.f32.mrb[7].mxu1  ;;  %1830 = vmatpush1.bf16.msra.mxu1 %v4438_v27  ;;  %v4488_v7 = vld [vmem:[#allocation16 + $0x1e4] ss:$8 sps:$4 sm:$0xff]   ;;  %v4486_v8 = vld [vmem:[#allocation16 + $0x1e0] ss:$8 sps:$4 sm:$0xff]  }
 0x3b2   : > { %v1340_v20 = vadd.f32 %v1336_v9, %v1323_v13  ;;  %1831 = vmatprep.subr.bf16.mxu1 %v4443_v23  ;;  %v4491_v9 = vld [vmem:[#allocation16 + $0x1f4] ss:$8 sps:$4 sm:$0xff]   ;;  %v4489_v10 = vld [vmem:[#allocation16 + $0x1f0] ss:$8 sps:$4 sm:$0xff]  }
 0x3b3   : > { %v5897_v21 = vadd.f32 %v1342_v11, %v1339_v16  ;;  %v4492_v11 = vld [vmem:[#allocation19 + $0x100] ss:$8 sps:$4 sm:$0xff]   ;;  %v4497_v13 = vld [vmem:[#allocation19 + $0x114] ss:$8 sps:$4 sm:$0xff]   ;;  %v4500_v15 = vld [vmem:[#allocation19 + $0x124] ss:$8 sps:$4 sm:$0xff]  }
 0x3b4   : > { %v5899_v24 = vadd.f32 %v1343_v14, %v1340_v20  ;;  %v4495_v14 = vld [vmem:[#allocation19 + $0x110] ss:$8 sps:$4 sm:$0xff]   ;;  %v4498_v16 = vld [vmem:[#allocation19 + $0x120] ss:$8 sps:$4 sm:$0xff]   ;;  %v4503_v18 = vld [vmem:[#allocation19 + $0x134] ss:$8 sps:$4 sm:$0xff]  }
 0x3b5   : > { %v1378_v26 = vpack.c.bf16 %v5897_v21, %v5897_v21  ;;  %1832 = vmatpush1.bf16.msra.mxu1 %v4441_v28  ;;  %v4501_v20 = vld [vmem:[#allocation19 + $0x130] ss:$8 sps:$4 sm:$0xff]   ;;  %v4509_v22 = vld [vmem:[#allocation19 + $0x154] ss:$8 sps:$4 sm:$0xff]   ;;  %v4512_v23 = vld [vmem:[#allocation19 + $0x164] ss:$8 sps:$4 sm:$0xff]  }
 0x3b6   : > { %v1379_v25 = vpack.c.bf16 %v5899_v24, %v5899_v24  ;;  %2305 = vmatprep.subr.bf16.mxu1 %v4494_v12  ;;  %v4507_v27 = vld [vmem:[#allocation19 + $0x150] ss:$8 sps:$4 sm:$0xff]   ;;  %v4510_v28 = vld [vmem:[#allocation19 + $0x160] ss:$8 sps:$4 sm:$0xff]  }
 0x3b7   : > { %v4561_v12 = vld [vmem:[#allocation16 + $0x270] ss:$8 sps:$4 sm:$0xff]  }
 0x3b8   : > { %1584 = vmatprep.mubr.bf16.mxu0 %v1379_v25  ;;  %v4506_v25 = vld [vmem:[#allocation19 + $0x144] ss:$8 sps:$4 sm:$0xff]  }
 0x3b9   : > { %1585 = vmatmul.mubr.bf16.vlgmr.msra.gmra.mrb[4].mxu0 %v1378_v26  ;;  %v4504_v26 = vld [vmem:[#allocation19 + $0x140] ss:$8 sps:$4 sm:$0xff]  }
 0x3ba   : > { %2055 = vmatpush1.bf16.msra.mxu0 %v4444_v29  ;;  %v4515_v29 = vld [vmem:[#allocation19 + $0x174] ss:$8 sps:$4 sm:$0xff]  }
 0x3bb   : > { %2056 = vmatprep.subr.bf16.mxu0 %v4449_v31  ;;  %v4518_v31 = vld [vmem:[#allocation19 + $0x184] ss:$8 sps:$4 sm:$0xff]  }
 0x3be   : > { %2057 = vmatpush1.bf16.msra.mxu0 %v4447_v32  ;;  %v4516_v32 = vld [vmem:[#allocation19 + $0x180] ss:$8 sps:$4 sm:$0xff]  }
 0x3bf   : > { %2058 = vmatprep.subr.bf16.mxu0 %v4452_v33  ;;  %v4521_v33 = vld [vmem:[#allocation19 + $0x194] ss:$8 sps:$4 sm:$0xff]  }
 0x3c2   : > { %2059 = vmatpush1.bf16.msra.mxu0 %v4450_v34  ;;  %v4519_v34 = vld [vmem:[#allocation19 + $0x190] ss:$8 sps:$4 sm:$0xff]  }
 0x3c3   : > { %2060 = vmatprep.subr.bf16.mxu0 %v4455_v35  ;;  %v4524_v35 = vld [vmem:[#allocation19 + $0x1a4] ss:$8 sps:$4 sm:$0xff]  }
 0x3c6   : > { %2061 = vmatpush1.bf16.msra.mxu0 %v4453_v36  ;;  %v4522_v36 = vld [vmem:[#allocation19 + $0x1a0] ss:$8 sps:$4 sm:$0xff]  }
 0x3c7   : > { %2062 = vmatprep.subr.bf16.mxu0 %v4458_v37  ;;  %v4527_v37 = vld [vmem:[#allocation19 + $0x1b4] ss:$8 sps:$4 sm:$0xff]  }
 0x3ca   : > { %2063 = vmatpush1.bf16.msra.mxu0 %v4456_v38  ;;  %v4525_v38 = vld [vmem:[#allocation19 + $0x1b0] ss:$8 sps:$4 sm:$0xff]  }
 0x3cb   : > { %2064 = vmatprep.subr.bf16.mxu0 %v4461_v39  ;;  %v4530_v39 = vld [vmem:[#allocation19 + $0x1c4] ss:$8 sps:$4 sm:$0xff]  }
 0x3ce   : > { %2065 = vmatpush1.bf16.msra.mxu0 %v4459_v40  ;;  %v4528_v40 = vld [vmem:[#allocation19 + $0x1c0] ss:$8 sps:$4 sm:$0xff]  }
 0x3cf   : > { %2066 = vmatprep.subr.bf16.mxu0 %v4464_v41  ;;  %v4533_v41 = vld [vmem:[#allocation19 + $0x1d4] ss:$8 sps:$4 sm:$0xff]  }
 0x3d2   : > { %2067 = vmatpush1.bf16.msra.mxu0 %v4462_v42  ;;  %v4531_v42 = vld [vmem:[#allocation19 + $0x1d0] ss:$8 sps:$4 sm:$0xff]  }
 0x3d3   : > { %2068 = vmatprep.subr.bf16.mxu0 %v4467_v43  ;;  %v1629_v43 = vld [vmem:[#allocation20] sm:$0x3] }
 0x3d6   : > { %2069 = vmatpush1.bf16.msra.mxu0 %v4465_v44  ;;  %v1634_v44 = vrot.slane %v1629_v43, %v5881_v17 }
 0x3d7   : > { %2070 = vmatprep.subr.bf16.mxu0 %v4470_v45  ;;  %v1638_v45 = vrot.slane %v1629_v43, %v5883_v19  ;;  %v4582_v43 = vld [vmem:[#allocation16 + $0x2e0] ss:$8 sps:$4 sm:$0xff]  }
 0x3da   : > { %2071 = vmatpush1.bf16.msra.mxu0 %v4468_v46 }
 0x3db   : > { %2072 = vmatprep.subr.bf16.mxu0 %v4473_v47 }
 0x3de   : > { %2073 = vmatpush1.bf16.msra.mxu0 %v4471_v48 }
 0x3df   : > { %2074 = vmatprep.subr.bf16.mxu0 %v4476_v49 }
 0x3e2   : > { %2075 = vmatpush1.bf16.msra.mxu0 %v4474_v50 }
 0x3e3   : > { %2076 = vmatprep.subr.bf16.mxu0 %v4479_v51 }
 0x3e6   : > { %2077 = vmatpush1.bf16.msra.mxu0 %v4477_v52 }
 0x3e7   : > { %2078 = vmatprep.subr.bf16.mxu0 %v4482_v53 }
 0x3ea   : > { %2079 = vmatpush1.bf16.msra.mxu0 %v4480_v54 }
 0x3eb   : > { %2080 = vmatprep.subr.bf16.mxu0 %v4485_v55 }
 0x3ee   : > { %2081 = vmatpush1.bf16.msra.mxu0 %v4483_v56 }
 0x3ef   : > { %2082 = vmatprep.subr.bf16.mxu0 %v4488_v7  ;;  %v4557_v7 = vld [vmem:[#allocation16 + $0x254] ss:$8 sps:$4 sm:$0xff]  }
 0x3f2   : > { %2083 = vmatpush1.bf16.msra.mxu0 %v4486_v8  ;;  %v4555_v8 = vld [vmem:[#allocation16 + $0x250] ss:$8 sps:$4 sm:$0xff]  }
 0x3f3   : > { %2084 = vmatprep.subr.bf16.mxu0 %v4491_v9  ;;  %v4560_v9 = vld [vmem:[#allocation16 + $0x264] ss:$8 sps:$4 sm:$0xff]  }
 0x3f6   : > { %2085 = vmatpush1.bf16.msra.mxu0 %v4489_v10  ;;  %v4558_v10 = vld [vmem:[#allocation16 + $0x260] ss:$8 sps:$4 sm:$0xff]  }
 0x48c   : > { %v1586_v60 = vpop.f32.mrb[4].mxu0 }
 0x48d   : > { %v1587_v61 = vadd.f32 %v1586_v60, %v1385_v58  ;;  %v1588_v62 = vpop.f32.mrb[5].mxu0  ;;  %v4536_v58 = vld [vmem:[#allocation19 + $0x1e4] ss:$8 sps:$4 sm:$0xff]   ;;  %v4537_v60 = vld [vmem:[#allocation19 + $0x1f0] ss:$8 sps:$4 sm:$0xff]  }
 0x48e   : > { %v1589_v63 = vadd.f32 %v1588_v62, %v1389_v59  ;;  %v1590_v1 = vpop.f32.mrb[6].mxu0  ;;  %v4534_v59 = vld [vmem:[#allocation19 + $0x1e0] ss:$8 sps:$4 sm:$0xff]   ;;  %v4545_v62 = vld [vmem:[#allocation16 + $0x214] ss:$8 sps:$4 sm:$0xff]  }
 0x48f   : > { %v1593_v2 = vmax.f32 %v1587_v61, 0.0  ;;  %v1591_v3 = vpop.f32.mrb[7].mxu0  ;;  %v4542_v61 = vld [vmem:[#allocation16 + $0x204] ss:$8 sps:$4 sm:$0xff]  }
 0x490   : > { %v1594_v4 = vmax.f32 %v1589_v63, 0.0  ;;  %2558 = vmatprep.subr.bf16.mxu0 %v4542_v61  ;;  %v4543_v63 = vld [vmem:[#allocation16 + $0x210] ss:$8 sps:$4 sm:$0xff]   ;;  %v4548_v1 = vld [vmem:[#allocation16 + $0x224] ss:$8 sps:$4 sm:$0xff]  }
 0x491   : > { %v1627_v6 = vpack.c.bf16 %v1593_v2, %v1593_v2  ;;  %v4546_v2 = vld [vmem:[#allocation16 + $0x220] ss:$8 sps:$4 sm:$0xff]   ;;  %v4551_v3 = vld [vmem:[#allocation16 + $0x234] ss:$8 sps:$4 sm:$0xff]  }
 0x492   : > { %v1628_v5 = vpack.c.bf16 %v1594_v4, %v1594_v4  ;;  %v4549_v4 = vld [vmem:[#allocation16 + $0x230] ss:$8 sps:$4 sm:$0xff]  }
 0x493   : > { %v4609_v61 = vld [vmem:[#allocation19 + $0x270] ss:$8 sps:$4 sm:$0xff]  }
 0x494   : > { %1833 = vmatprep.mubr.bf16.mxu1 %v1628_v5  ;;  %v4554_v5 = vld [vmem:[#allocation16 + $0x244] ss:$8 sps:$4 sm:$0xff]  }
 0x495   : > { %1834 = vmatmul.mubr.bf16.vlgmr.msra.gmra.mrb[8].mxu1 %v1627_v6  ;;  %v4552_v6 = vld [vmem:[#allocation16 + $0x240] ss:$8 sps:$4 sm:$0xff]  }
 0x496   : > { %2306 = vmatpush1.bf16.msra.mxu1 %v4492_v11  ;;  %v4563_v11 = vld [vmem:[#allocation16 + $0x274] ss:$8 sps:$4 sm:$0xff]  }
 0x497   : > { %2307 = vmatprep.subr.bf16.mxu1 %v4497_v13  ;;  %v4566_v13 = vld [vmem:[#allocation16 + $0x284] ss:$8 sps:$4 sm:$0xff]  }
 0x49a   : > { %2308 = vmatpush1.bf16.msra.mxu1 %v4495_v14  ;;  %v4564_v14 = vld [vmem:[#allocation16 + $0x280] ss:$8 sps:$4 sm:$0xff]  }
 0x49b   : > { %2309 = vmatprep.subr.bf16.mxu1 %v4500_v15  ;;  %v4569_v15 = vld [vmem:[#allocation16 + $0x294] ss:$8 sps:$4 sm:$0xff]  }
 0x49e   : > { %2310 = vmatpush1.bf16.msra.mxu1 %v4498_v16  ;;  %v4567_v16 = vld [vmem:[#allocation16 + $0x290] ss:$8 sps:$4 sm:$0xff]  }
 0x49f   : > { %2311 = vmatprep.subr.bf16.mxu1 %v4503_v18  ;;  %v4572_v18 = vld [vmem:[#allocation16 + $0x2a4] ss:$8 sps:$4 sm:$0xff]  }
 0x4a2   : > { %2312 = vmatpush1.bf16.msra.mxu1 %v4501_v20  ;;  %v4570_v20 = vld [vmem:[#allocation16 + $0x2a0] ss:$8 sps:$4 sm:$0xff]  }
 0x4a3   : > { %2313 = vmatprep.subr.bf16.mxu1 %v4506_v25  ;;  %v4575_v25 = vld [vmem:[#allocation16 + $0x2b4] ss:$8 sps:$4 sm:$0xff]  }
 0x4a6   : > { %2314 = vmatpush1.bf16.msra.mxu1 %v4504_v26  ;;  %v4573_v26 = vld [vmem:[#allocation16 + $0x2b0] ss:$8 sps:$4 sm:$0xff]  }
 0x4a7   : > { %2315 = vmatprep.subr.bf16.mxu1 %v4509_v22  ;;  %v4578_v22 = vld [vmem:[#allocation16 + $0x2c4] ss:$8 sps:$4 sm:$0xff]  }
 0x4aa   : > { %2316 = vmatpush1.bf16.msra.mxu1 %v4507_v27  ;;  %v4576_v27 = vld [vmem:[#allocation16 + $0x2c0] ss:$8 sps:$4 sm:$0xff]  }
 0x4ab   : > { %2317 = vmatprep.subr.bf16.mxu1 %v4512_v23  ;;  %v4581_v23 = vld [vmem:[#allocation16 + $0x2d4] ss:$8 sps:$4 sm:$0xff]  }
 0x4ae   : > { %2318 = vmatpush1.bf16.msra.mxu1 %v4510_v28  ;;  %v4579_v28 = vld [vmem:[#allocation16 + $0x2d0] ss:$8 sps:$4 sm:$0xff]  }
 0x4af   : > { %2319 = vmatprep.subr.bf16.mxu1 %v4515_v29  ;;  %v1882_v29 = vld [vmem:[#allocation17 + $0x2] sm:$0x3] }
 0x4b2   : > { %2320 = vmatpush1.bf16.msra.mxu1 %v4513_v30  ;;  %v1887_v30 = vrot.slane %v1882_v29, %v5881_v17 }
 0x4b3   : > { %2321 = vmatprep.subr.bf16.mxu1 %v4518_v31  ;;  %v1891_v31 = vrot.slane %v1882_v29, %v5883_v19 }
 0x4b6   : > { %2322 = vmatpush1.bf16.msra.mxu1 %v4516_v32 }
 0x4b7   : > { %2323 = vmatprep.subr.bf16.mxu1 %v4521_v33 }
 0x4ba   : > { %2324 = vmatpush1.bf16.msra.mxu1 %v4519_v34 }
 0x4bb   : > { %2325 = vmatprep.subr.bf16.mxu1 %v4524_v35 }
 0x4be   : > { %2326 = vmatpush1.bf16.msra.mxu1 %v4522_v36 }
 0x4bf   : > { %2327 = vmatprep.subr.bf16.mxu1 %v4527_v37 }
 0x4c2   : > { %2328 = vmatpush1.bf16.msra.mxu1 %v4525_v38 }
 0x4c3   : > { %2329 = vmatprep.subr.bf16.mxu1 %v4530_v39 }
 0x4c6   : > { %2330 = vmatpush1.bf16.msra.mxu1 %v4528_v40 }
 0x4c7   : > { %2331 = vmatprep.subr.bf16.mxu1 %v4533_v41 }
 0x4ca   : > { %2332 = vmatpush1.bf16.msra.mxu1 %v4531_v42  ;;  %v4584_v42 = vld [vmem:[#allocation16 + $0x2e4] ss:$8 sps:$4 sm:$0xff]  }
 0x4cb   : > { %2333 = vmatprep.subr.bf16.mxu1 %v4536_v58  ;;  %v4605_v58 = vld [vmem:[#allocation19 + $0x254] ss:$8 sps:$4 sm:$0xff]  }
 0x4ce   : > { %2334 = vmatpush1.bf16.msra.mxu1 %v4534_v59  ;;  %v4603_v59 = vld [vmem:[#allocation19 + $0x250] ss:$8 sps:$4 sm:$0xff]  }
 0x568   : > { %v1835_v46 = vpop.f32.mrb[8].mxu1 }
 0x569   : > { %v1836_v47 = vadd.f32 %v1835_v46, %v1634_v44  ;;  %v1837_v48 = vpop.f32.mrb[9].mxu1  ;;  %v4587_v44 = vld [vmem:[#allocation16 + $0x2f4] ss:$8 sps:$4 sm:$0xff]   ;;  %v4588_v46 = vld [vmem:[#allocation19 + $0x200] ss:$8 sps:$4 sm:$0xff]  }
 0x56a   : > { %v1838_v49 = vadd.f32 %v1837_v48, %v1638_v45  ;;  %v1839_v50 = vpop.f32.mrb[10].mxu1  ;;  %v4585_v45 = vld [vmem:[#allocation16 + $0x2f0] ss:$8 sps:$4 sm:$0xff]  }
 0x56b   : > { %v1842_v51 = vadd.f32 %v1836_v47, %v5897_v21  ;;  %v1840_v52 = vpop.f32.mrb[11].mxu1  ;;  %v4539_v21 = vld [vmem:[#allocation19 + $0x1f4] ss:$8 sps:$4 sm:$0xff]   ;;  %v4590_v47 = vld [vmem:[#allocation19 + $0x204] ss:$8 sps:$4 sm:$0xff]  }
 0x56c   : > { %v1843_v53 = vadd.f32 %v1838_v49, %v5899_v24  ;;  %2335 = vmatprep.subr.bf16.mxu1 %v4539_v21  ;;  %v4540_v24 = vld [vmem:[#allocation16 + $0x200] ss:$8 sps:$4 sm:$0xff]  }
 0x56d   : > { %v5911_v54 = vmax.f32 %v1842_v51, 0.0  ;;  %2336 = vmatpush1.bf16.msra.mxu1 %v4537_v60  ;;  %v4593_v48 = vld [vmem:[#allocation19 + $0x214] ss:$8 sps:$4 sm:$0xff]   ;;  %v4591_v49 = vld [vmem:[#allocation19 + $0x210] ss:$8 sps:$4 sm:$0xff]  }
 0x56e   : > { %v5913_v55 = vmax.f32 %v1843_v53, 0.0  ;;  %2809 = vmatprep.subr.bf16.mxu1 %v4590_v47  ;;  %v4596_v50 = vld [vmem:[#allocation19 + $0x224] ss:$8 sps:$4 sm:$0xff]   ;;  %v4594_v51 = vld [vmem:[#allocation19 + $0x220] ss:$8 sps:$4 sm:$0xff]  }
 0x56f   : > { %v1879_v57 = vpack.c.bf16 %v5911_v54, %v5911_v54  ;;  %v4599_v52 = vld [vmem:[#allocation19 + $0x234] ss:$8 sps:$4 sm:$0xff]   ;;  %v4597_v53 = vld [vmem:[#allocation19 + $0x230] ss:$8 sps:$4 sm:$0xff]   ;;  %v4608_v21 = vld [vmem:[#allocation19 + $0x264] ss:$8 sps:$4 sm:$0xff]  }
 0x570   : > { %v1880_v56 = vpack.c.bf16 %v5913_v55, %v5913_v55  ;;  %v4606_v60 = vld [vmem:[#allocation19 + $0x260] ss:$8 sps:$4 sm:$0xff]  }
 0x572   : > { %2086 = vmatprep.mubr.bf16.mxu0 %v1880_v56  ;;  %v4602_v56 = vld [vmem:[#allocation19 + $0x244] ss:$8 sps:$4 sm:$0xff]  }
 0x573   : > { %2087 = vmatmul.mubr.bf16.vlgmr.msra.gmra.mrb[8].mxu0 %v1879_v57  ;;  %v4600_v57 = vld [vmem:[#allocation19 + $0x240] ss:$8 sps:$4 sm:$0xff]  }
 0x574   : > { %2559 = vmatpush1.bf16.msra.mxu0 %v4540_v24  ;;  %v4611_v24 = vld [vmem:[#allocation19 + $0x274] ss:$8 sps:$4 sm:$0xff]  }
 0x575   : > { %2560 = vmatprep.subr.bf16.mxu0 %v4545_v62  ;;  %v4614_v62 = vld [vmem:[#allocation19 + $0x284] ss:$8 sps:$4 sm:$0xff]  }
 0x578   : > { %2561 = vmatpush1.bf16.msra.mxu0 %v4543_v63  ;;  %v4612_v63 = vld [vmem:[#allocation19 + $0x280] ss:$8 sps:$4 sm:$0xff]  }
 0x579   : > { %2562 = vmatprep.subr.bf16.mxu0 %v4548_v1  ;;  %v4617_v1 = vld [vmem:[#allocation19 + $0x294] ss:$8 sps:$4 sm:$0xff]  }
 0x57c   : > { %2563 = vmatpush1.bf16.msra.mxu0 %v4546_v2  ;;  %v4615_v2 = vld [vmem:[#allocation19 + $0x290] ss:$8 sps:$4 sm:$0xff]  }
 0x57d   : > { %2564 = vmatprep.subr.bf16.mxu0 %v4551_v3  ;;  %v4620_v3 = vld [vmem:[#allocation19 + $0x2a4] ss:$8 sps:$4 sm:$0xff]  }
 0x580   : > { %2565 = vmatpush1.bf16.msra.mxu0 %v4549_v4  ;;  %v4618_v4 = vld [vmem:[#allocation19 + $0x2a0] ss:$8 sps:$4 sm:$0xff]  }
 0x581   : > { %2566 = vmatprep.subr.bf16.mxu0 %v4554_v5  ;;  %v4623_v5 = vld [vmem:[#allocation19 + $0x2b4] ss:$8 sps:$4 sm:$0xff]  }
 0x584   : > { %2567 = vmatpush1.bf16.msra.mxu0 %v4552_v6  ;;  %v4621_v6 = vld [vmem:[#allocation19 + $0x2b0] ss:$8 sps:$4 sm:$0xff]  }
 0x585   : > { %2568 = vmatprep.subr.bf16.mxu0 %v4557_v7  ;;  %v4626_v7 = vld [vmem:[#allocation19 + $0x2c4] ss:$8 sps:$4 sm:$0xff]  }
 0x588   : > { %2569 = vmatpush1.bf16.msra.mxu0 %v4555_v8  ;;  %v4624_v8 = vld [vmem:[#allocation19 + $0x2c0] ss:$8 sps:$4 sm:$0xff]  }
 0x589   : > { %2570 = vmatprep.subr.bf16.mxu0 %v4560_v9  ;;  %v4629_v9 = vld [vmem:[#allocation19 + $0x2d4] ss:$8 sps:$4 sm:$0xff]  }
 0x58c   : > { %2571 = vmatpush1.bf16.msra.mxu0 %v4558_v10  ;;  %v4627_v10 = vld [vmem:[#allocation19 + $0x2d0] ss:$8 sps:$4 sm:$0xff]  }
 0x58d   : > { %2572 = vmatprep.subr.bf16.mxu0 %v4563_v11  ;;  %v2133_v11 = vld [vmem:[#allocation20 + $0x2] sm:$0x3] }
 0x590   : > { %2573 = vmatpush1.bf16.msra.mxu0 %v4561_v12  ;;  %v2138_v12 = vrot.slane %v2133_v11, %v5881_v17 }
 0x591   : > { %2574 = vmatprep.subr.bf16.mxu0 %v4566_v13  ;;  %v2142_v13 = vrot.slane %v2133_v11, %v5883_v19 }
 0x594   : > { %2575 = vmatpush1.bf16.msra.mxu0 %v4564_v14 }
 0x595   : > { %2576 = vmatprep.subr.bf16.mxu0 %v4569_v15 }
 0x598   : > { %2577 = vmatpush1.bf16.msra.mxu0 %v4567_v16 }
 0x599   : > { %2578 = vmatprep.subr.bf16.mxu0 %v4572_v18 }
 0x59c   : > { %2579 = vmatpush1.bf16.msra.mxu0 %v4570_v20 }
 0x59d   : > { %2580 = vmatprep.subr.bf16.mxu0 %v4575_v25 }
 0x5a0   : > { %2581 = vmatpush1.bf16.msra.mxu0 %v4573_v26 }
 0x5a1   : > { %2582 = vmatprep.subr.bf16.mxu0 %v4578_v22 }
 0x5a4   : > { %2583 = vmatpush1.bf16.msra.mxu0 %v4576_v27 }
 0x5a5   : > { %2584 = vmatprep.subr.bf16.mxu0 %v4581_v23 }
 0x5a8   : > { %2585 = vmatpush1.bf16.msra.mxu0 %v4579_v28 }
 0x5a9   : > { %2586 = vmatprep.subr.bf16.mxu0 %v4584_v42  ;;  %v4646_v42 = vld [vmem:[%s6278_s27 + $0x68] sm:$0xff]  }
 0x5ac   : > { %2587 = vmatpush1.bf16.msra.mxu0 %v4582_v43  ;;  %v2386_v43 = vld [vmem:[#allocation17 + $0x4] sm:$0x3] }
 0x5ad   : > { %2588 = vmatprep.subr.bf16.mxu0 %v4587_v44  ;;  %v2391_v44 = vrot.slane %v2386_v43, %v5881_v17 }
 0x5b0   : > { %2589 = vmatpush1.bf16.msra.mxu0 %v4585_v45  ;;  %v2395_v45 = vrot.slane %v2386_v43, %v5883_v19 }
 0x646   : > { %v2088_v32 = vpop.f32.mrb[8].mxu0 }
 0x647   : > { %v2089_v33 = vadd.f32 %v2088_v32, %v1887_v30  ;;  %v2090_v34 = vpop.f32.mrb[9].mxu0  ;;  %v4632_v30 = vld [vmem:[#allocation19 + $0x2e4] ss:$8 sps:$4 sm:$0xff]   ;;  %v4633_v32 = vld [vmem:[#allocation19 + $0x2f0] ss:$8 sps:$4 sm:$0xff]  }
 0x648   : > { %v2091_v35 = vadd.f32 %v2090_v34, %v1891_v31  ;;  %v2092_v36 = vpop.f32.mrb[10].mxu0  ;;  %v4630_v31 = vld [vmem:[#allocation19 + $0x2e0] ss:$8 sps:$4 sm:$0xff]  }
 0x649   : > { %v2095_v37 = vmax.f32 %v2089_v33, 0.0  ;;  %v2093_v38 = vpop.f32.mrb[11].mxu0  ;;  %v4637_v33 = vld [vmem:[%s6278_s27] sm:$0xff]   ;;  %v4638_v34 = vld [vmem:[%s6278_s27 + $0x48] sm:$0xff]   ;;  %v4640_v36 = vld [vmem:[%s6278_s27 + $0x50] sm:$0xff]  }
 0x64a   : > { %v2096_v39 = vmax.f32 %v2091_v35, 0.0  ;;  %v4639_v35 = vld [vmem:[%s6278_s27 + $0x8] sm:$0xff]   ;;  %v4642_v38 = vld [vmem:[%s6278_s27 + $0x58] sm:$0xff]  }
 0x64b   : > { %v2130_v41 = vpack.c.bf16 %v2095_v37, %v2095_v37  ;;  %v4641_v37 = vld [vmem:[%s6278_s27 + $0x10] sm:$0xff]  }
 0x64c   : > { %v2131_v40 = vpack.c.bf16 %v2096_v39, %v2096_v39  ;;  %v4643_v39 = vld [vmem:[%s6278_s27 + $0x18] sm:$0xff]  }
 0x64e   : > { %2337 = vmatprep.mubr.bf16.mxu1 %v2131_v40  ;;  %v4644_v40 = vld [vmem:[%s6278_s27 + $0x60] sm:$0xff]  }
 0x64f   : > { %2338 = vmatmul.mubr.bf16.vlgmr.msra.gmra.mrb[12].mxu1 %v2130_v41  ;;  %v4645_v41 = vld [vmem:[%s6278_s27 + $0x20] sm:$0xff]  }
 0x650   : > { %2810 = vmatpush1.bf16.msra.mxu1 %v4588_v46 }
 0x651   : > { %2811 = vmatprep.subr.bf16.mxu1 %v4593_v48 }
 0x654   : > { %2812 = vmatpush1.bf16.msra.mxu1 %v4591_v49 }
 0x655   : > { %2813 = vmatprep.subr.bf16.mxu1 %v4596_v50 }
 0x658   : > { %2814 = vmatpush1.bf16.msra.mxu1 %v4594_v51 }
 0x659   : > { %2815 = vmatprep.subr.bf16.mxu1 %v4599_v52 }
 0x65c   : > { %2816 = vmatpush1.bf16.msra.mxu1 %v4597_v53 }
 0x65d   : > { %2817 = vmatprep.subr.bf16.mxu1 %v4602_v56 }
 0x660   : > { %2818 = vmatpush1.bf16.msra.mxu1 %v4600_v57 }
 0x661   : > { %2819 = vmatprep.subr.bf16.mxu1 %v4605_v58  ;;  %v4647_v58 = vld [vmem:[%s6278_s27 + $0x28] sm:$0xff]  }
 0x664   : > { %2820 = vmatpush1.bf16.msra.mxu1 %v4603_v59  ;;  %v4648_v59 = vld [vmem:[%s6278_s27 + $0x70] sm:$0xff]  }
 0x665   : > { %2821 = vmatprep.subr.bf16.mxu1 %v4608_v21  ;;  %v4649_v21 = vld [vmem:[%s6278_s27 + $0x30] sm:$0xff]  }
 0x668   : > { %2822 = vmatpush1.bf16.msra.mxu1 %v4606_v60  ;;  %v4650_v60 = vld [vmem:[%s6278_s27 + $0x78] sm:$0xff]  }
 0x669   : > { %2823 = vmatprep.subr.bf16.mxu1 %v4611_v24  ;;  %v4651_v24 = vld [vmem:[%s6278_s27 + $0x38] sm:$0xff]  }
 0x66c   : > { %2824 = vmatpush1.bf16.msra.mxu1 %v4609_v61  ;;  %v5246_v61 = vmov 0.0  }
 0x66d   : > { %2825 = vmatprep.subr.bf16.mxu1 %v4614_v62  ;;  %v2637_v62 = vld [vmem:[#allocation20 + $0x4] sm:$0x3] }
 0x670   : > { %2826 = vmatpush1.bf16.msra.mxu1 %v4612_v63  ;;  %v2642_v63 = vrot.slane %v2637_v62, %v5881_v17  ;;  %v4652_v17 = vld [vmem:[#allocation25] sm:$0xff]  }
 0x671   : > { %2827 = vmatprep.subr.bf16.mxu1 %v4617_v1  ;;  %v2646_v1 = vrot.slane %v2637_v62, %v5883_v19 }
 0x674   : > { %2828 = vmatpush1.bf16.msra.mxu1 %v4615_v2 }
 0x675   : > { %2829 = vmatprep.subr.bf16.mxu1 %v4620_v3 }
 0x678   : > { %2830 = vmatpush1.bf16.msra.mxu1 %v4618_v4 }
 0x679   : > { %2831 = vmatprep.subr.bf16.mxu1 %v4623_v5 }
 0x67c   : > { %2832 = vmatpush1.bf16.msra.mxu1 %v4621_v6 }
 0x67d   : > { %2833 = vmatprep.subr.bf16.mxu1 %v4626_v7 }
 0x680   : > { %2834 = vmatpush1.bf16.msra.mxu1 %v4624_v8 }
 0x681   : > { %2835 = vmatprep.subr.bf16.mxu1 %v4629_v9 }
 0x684   : > { %2836 = vmatpush1.bf16.msra.mxu1 %v4627_v10 }
 0x685   : > { %2837 = vmatprep.subr.bf16.mxu1 %v4632_v30  ;;  %v4666_v30 = vld [vmem:[%s6279_s28 + $0x30] sm:$0xff]  }
 0x688   : > { %2838 = vmatpush1.bf16.msra.mxu1 %v4630_v31 }
 0x722   : > { %v2339_v14 = vpop.f32.mrb[12].mxu1 }
 0x723   : > { %v2340_v15 = vadd.f32 %v2339_v14, %v2138_v12  ;;  %v2341_v16 = vpop.f32.mrb[13].mxu1  ;;  %v4654_v14 = vld [vmem:[#allocation25 + $0x10] sm:$0xff]  }
 0x724   : > { %v2342_v18 = vadd.f32 %v2341_v16, %v2142_v13  ;;  %v2343_v20 = vpop.f32.mrb[14].mxu1  ;;  %v4653_v13 = vld [vmem:[#allocation25 + $0x8] sm:$0xff]   ;;  %v4656_v16 = vld [vmem:[#allocation25 + $0x20] sm:$0xff]  }
 0x725   : > { %v2346_v25 = vadd.f32 %v2340_v15, %v5911_v54  ;;  %v2344_v26 = vpop.f32.mrb[15].mxu1  ;;  %v4635_v54 = vld [vmem:[#allocation19 + $0x2f4] ss:$8 sps:$4 sm:$0xff]   ;;  %v4655_v15 = vld [vmem:[#allocation25 + $0x18] sm:$0xff]   ;;  %v4658_v20 = vld [vmem:[#allocation25 + $0x30] sm:$0xff]  }
 0x726   : > { %v2347_v22 = vadd.f32 %v2342_v18, %v5913_v55  ;;  %2839 = vmatprep.subr.bf16.mxu1 %v4635_v54  ;;  %v4636_v55 = vld [vmem:[%s6278_s27 + $0x40] sm:$0xff]   ;;  %v3950_v54 = vld [vmem:[#allocation23] ss:$0 sm:$0xff] }
 0x727   : > { %v5925_v27 = vmax.f32 %v2346_v25, 0.0  ;;  %2840 = vmatpush1.bf16.msra.mxu1 %v4633_v32  ;;  %4003 = vmatprep.subr.bf16.mxu0 %v4636_v55  ;;  %v4657_v18 = vld [vmem:[#allocation25 + $0x28] sm:$0xff]   ;;  %v4659_v25 = vld [vmem:[#allocation25 + $0x38] sm:$0xff]  }
 0x728   : > { %v5927_v23 = vmax.f32 %v2347_v22, 0.0  ;;  %4065 = vmatprep.subr.bf16.mxu1 %v5246_v61  ;;  %v4660_v26 = vld [vmem:[%s6279_s28] sm:$0xff]   ;;  %v4661_v22 = vld [vmem:[%s6279_s28 + $0x8] sm:$0xff]  }
 0x729   : > { %v2383_v29 = vpack.c.bf16 %v5925_v27, %v5925_v27 }
 0x72a   : > { %v2384_v28 = vpack.c.bf16 %v5927_v23, %v5927_v23 }
 0x72c   : > { %2590 = vmatprep.mubr.bf16.mxu0 %v2384_v28  ;;  %v4664_v28 = vld [vmem:[%s6279_s28 + $0x20] sm:$0xff]  }
 0x72d   : > { %2591 = vmatmul.mubr.bf16.vlgmr.msra.gmra.mrb[12].mxu0 %v2383_v29  ;;  %v4665_v29 = vld [vmem:[%s6279_s28 + $0x28] sm:$0xff]  }
 0x72e   : > { %4004 = vmatpush3.bf16.msra.mxu0 %v4637_v33 }
 0x72f   : > { %4005 = vmatprep.subr.bf16.mxu0 %v4638_v34 }
 0x732   : > { %4006 = vmatpush3.bf16.msra.mxu0 %v4639_v35 }
 0x733   : > { %4007 = vmatprep.subr.bf16.mxu0 %v4640_v36 }
 0x736   : > { %4008 = vmatpush3.bf16.msra.mxu0 %v4641_v37  ;;  %v4667_v37 = vld [vmem:[%s6279_s28 + $0x38] sm:$0xff]  }
 0x737   : > { %4009 = vmatprep.subr.bf16.mxu0 %v4642_v38  ;;  %v3252_v38 = vld [vmem:[#allocation22] sm:$0xff] }
 0x73a   : > { %4010 = vmatpush3.bf16.msra.mxu0 %v4643_v39  ;;  %v3988_v39 = vcombine.high %v3252_v38, %v3252_v38 }
 0x73b   : > { %4011 = vmatprep.subr.bf16.mxu0 %v4644_v40  ;;  %v3987_v40 = vcombine.low %v3252_v38, %v3252_v38 }
 0x73e   : > { %4012 = vmatpush3.bf16.msra.mxu0 %v4645_v41  ;;  %v3263_v41 = vsel %vm1078_vm0, %v3987_v40, 0 }
 0x73f   : > { %4013 = vmatprep.subr.bf16.mxu0 %v4646_v42 }
 0x742   : > { %4014 = vmatpush3.bf16.msra.mxu0 %v4647_v58 }
 0x743   : > { %4015 = vmatprep.subr.bf16.mxu0 %v4648_v59 }
 0x746   : > { %4016 = vmatpush3.bf16.msra.mxu0 %v4649_v21 }
 0x747   : > { %4017 = vmatprep.subr.bf16.mxu0 %v4650_v60 }
 0x74a   : > { %4018 = vmatpush3.bf16.msra.mxu0 %v4651_v24 }
 0x74b   : > { %4045 = vmatprep.subr.bf16.mxu0 %v5246_v61 }
 0x800   : > { %v2592_v46 = vpop.f32.mrb[12].mxu0 }
 0x801   : > { %v2593_v47 = vadd.f32 %v2592_v46, %v2391_v44  ;;  %v2594_v48 = vpop.f32.mrb[13].mxu0  ;;  %v5248_v46 = vmov 1.0|1.0  }
 0x802   : > { %v2595_v49 = vadd.f32 %v2594_v48, %v2395_v45  ;;  %v2596_v50 = vpop.f32.mrb[14].mxu0 }
 0x803   : > { %v2599_v51 = vmax.f32 %v2593_v47, 0.0  ;;  %v2597_v52 = vpop.f32.mrb[15].mxu0  ;;  %v2854_v47 = vld [vmem:[%s910_s14] sm:$0xf]  ;;  %s5100_s14 = sshll.u32 %s5249_s18, 4  ;;  %s5101_s14 = int_to_ptr.vmem [resolvable:$false] %s5100_s14 }
 0x804   : > { %v2600_v53 = vmax.f32 %v2595_v49, 0.0  ;;  %v2855_v48 = vunpack.c.l.bf16 %v2854_v47  ;;  %s5102_s12 = scalar_lea.vmem %s5101_s14, 256  ;;  %p5103_p9 = scmp.lt.s32.totalorder %s6070_s25, %s5101_s14 }
 0x805   : > { %v2634_v57 = vpack.c.bf16 %v2599_v51, %v2599_v51  ;;  %p5104_p7 = scmp.lt.s32.totalorder %s5102_s12, %s5096_s23 }
 0x806   : > { %v2635_v56 = vpack.c.bf16 %v2600_v53, %v2600_v53  ;;  %v3311_v53 = vld [vmem:[%s6281_s10] sm:$0xf] }
 0x807   : > { %v3313_v59 = vsel %vm1078_vm0, %v3311_v53, 0  ;;  %p5105_p8 = por %p5104_p7, %p5103_p9 }
 0x808   : > { %2841 = vmatprep.mubr.bf16.mxu1 %v2635_v56 }
 0x809   : > { %2842 = vmatmul.mubr.bf16.vlgmr.msra.gmra.mrb[16].mxu1 %v2634_v57  ;;  %p5106_p11 = pnand %p5105_p8, %p5099_p5 }
 0x80a   : > { %4081 = vmatprep.mubr.msk.bf16.mxu1 %vm5247_vm3, %v5246_v61  ;;  %4066 = vmatpush3.bf16.msra.mxu1 %v4660_v26 }
 0x80b   : > { %4067 = vmatprep.subr.bf16.mxu1 %v5246_v61 }
 0x80e   : > { %4068 = vmatpush3.bf16.msra.mxu1 %v4661_v22 }
 0x80f   : > { %4069 = vmatprep.subr.bf16.mxu1 %v5246_v61 }
 0x8dc   : > { %v2843_v2 = vpop.f32.mrb[16].mxu1 }
 0x8dd   : > { %v2844_v3 = vadd.f32 %v2843_v2, %v2642_v63  ;;  %v2845_v4 = vpop.f32.mrb[17].mxu1 }
 0x8de   : > { %v2846_v5 = vadd.f32 %v2845_v4, %v2646_v1  ;;  %v2847_v6 = vpop.f32.mrb[18].mxu1 }
 0x8df   : > { %v2850_v7 = vadd.f32 %v2844_v3, %v5925_v27  ;;  %v2848_v8 = vpop.f32.mrb[19].mxu1  ;;  %v4662_v27 = vld [vmem:[%s6279_s28 + $0x10] sm:$0xff]  }
 0x8e0   : > { %v2851_v9 = vadd.f32 %v2846_v5, %v5927_v23  ;;  %4070 = vmatpush3.bf16.msra.mxu1 %v4662_v27  ;;  %v4663_v23 = vld [vmem:[%s6279_s28 + $0x18] sm:$0xff]  }
 0x8e1   : > { %v5989_v10 = vmax.f32 %v2850_v7, 0.0  ;;  %4071 = vmatprep.subr.bf16.mxu1 %v5246_v61 }
 0x8e2   : > { %v5991_v11 = vmax.f32 %v2851_v9, 0.0 }
 0x8e3   : > { %v2888_v19 = vpack.c.bf16 %v5989_v10, %v5989_v10 }
 0x8e4   : > { %v2889_v12 = vpack.c.bf16 %v5991_v11, %v5991_v11  ;;  %4072 = vmatpush3.bf16.msra.mxu1 %v4663_v23 }
 0x8e5   : > { %4073 = vmatprep.subr.bf16.mxu1 %v5246_v61 }
 0x8e6   : > { %3025 = vmatprep.mubr.bf16.mxu0 %v2889_v12 }
 0x8e7   : > { %3026 = vmatmul.mubr.bf16.vlgmr.msra.gmra.mrb[16].mxu0 %v2888_v19 }
 0x8e8   : > { %4046 = vmatpush3.bf16.msra.mxu0 %v4652_v17  ;;  %4061 = vmatprep.mubr.msk.bf16.mxu0 %vm5247_vm3, %v5246_v61 }
 0x8e9   : > { %4047 = vmatprep.subr.bf16.mxu0 %v5246_v61  ;;  %4074 = vmatpush3.bf16.msra.mxu1 %v4664_v28 }
 0x8ea   : > { %4075 = vmatprep.subr.bf16.mxu1 %v5246_v61 }
 0x8ec   : > { %4048 = vmatpush3.bf16.msra.mxu0 %v4653_v13 }
 0x8ed   : > { %4049 = vmatprep.subr.bf16.mxu0 %v5246_v61  ;;  %4076 = vmatpush3.bf16.msra.mxu1 %v4665_v29 }
 0x8ee   : > { %4077 = vmatprep.subr.bf16.mxu1 %v5246_v61 }
 0x8f0   : > { %4050 = vmatpush3.bf16.msra.mxu0 %v4654_v14 }
 0x8f1   : > { %4051 = vmatprep.subr.bf16.mxu0 %v5246_v61  ;;  %4078 = vmatpush3.bf16.msra.mxu1 %v4666_v30 }
 0x8f2   : > { %4079 = vmatprep.subr.bf16.mxu1 %v5246_v61 }
 0x8f4   : > { %4052 = vmatpush3.bf16.msra.mxu0 %v4655_v15 }
 0x8f5   : > { %4053 = vmatprep.subr.bf16.mxu0 %v5246_v61  ;;  %4080 = vmatpush3.bf16.msra.mxu1 %v4667_v37 }
 0x8f8   : > { %4054 = vmatpush3.bf16.msra.mxu0 %v4656_v16 }
 0x8f9   : > { %4055 = vmatprep.subr.bf16.mxu0 %v5246_v61 }
 0x8fc   : > { %4056 = vmatpush3.bf16.msra.mxu0 %v4657_v18 }
 0x8fd   : > { %4057 = vmatprep.subr.bf16.mxu0 %v5246_v61 }
 0x900   : > { %4058 = vmatpush3.bf16.msra.mxu0 %v4658_v20 }
 0x901   : > { %4059 = vmatprep.subr.bf16.mxu0 %v5246_v61 }
 0x904   : > { %4060 = vmatpush3.bf16.msra.mxu0 %v4659_v25 }
 0x905   : > { %3989 = vmatprep.subr.msk.bf16.mxu0 %vm1078_vm0, %v3988_v39 }
 0x9ba   : > { %v4019_v31 = vpop.f32.mrb[16].mxu0 }
 0x9bb   : > { %v4020_v32 = vpop.f32.mrb[17].mxu0 }
 0x9bc   : > { %v4021_v55 = vadd.f32 %v4020_v32, %v4019_v31  ;;  %v4022_v33 = vpop.f32.mrb[18].mxu0 }
 0x9bd   : > { %v4023_v34 = vpop.f32.mrb[19].mxu0 }
 0x9be   : > { %v6036_v35 = vadd.f32 %v4021_v55, %v3950_v54 }
 0x9c0   : > { %v3033_v36 = vpack.c.bf16 %v6036_v35, %v6036_v35 }
 0x9c2   : > { %4062 = vmatmul.mubr.bf16.vlgmr.msra.gmra.mrb[20].mxu0 %v3033_v36  ;;  %v3138_v42 = vunpack.c.l.bf16 %v3033_v36 }
 0x9c3   : > { %3300 = vmatprep.mubr.bf16.mxu0 %v5245_v0  ;;  %3269 = vmatpush1.bf16.msra.mxu0 %v3263_v41 }
 0x9c4   : > { %4085 = vmatprep.subr.bf16.mxu0 %v5246_v61 }
 0xa95   : > { %v3132_v43 = vpop.f32.mrb[20].mxu0 }
 0xa96   : > { %vm3139_vm4 = vcmp.gt.f32.partialorder %v3138_v42, %v3132_v43  ;;  %v4063_v0 = vpop.f32.mrb[21].mxu0 }
 0xa97   : > { %vm3984_vm5 = vmpackc.low %vm3139_vm4, %vm3139_vm4  ;;  %v3135_v44 = vpop.f32.mrb[22].mxu0 }
 0xa98   : > { %v4064_v45 = vpop.f32.mrb[23].mxu0  ;;  %4082 = vmatmul.mubr.msk.bf16.vlgmr.msra.gmra.mrb[20].mxu1 %vm3984_vm5, %v5248_v46 }
 0xb6b   : > { %v3241_v49 = vpop.f32.mrb[20].mxu1 }
 0xb6c   : > { %vm3247_vm6 = vcmp.gt.f32.partialorder %v3241_v49, 0.0  ;;  %v4083_v50 = vpop.f32.mrb[21].mxu1 }
 0xb6d   : > { %v3986_v51 = vsel %vm3247_vm6, 1.0, %v5246_v61  ;;  %v3244_v52 = vpop.f32.mrb[22].mxu1 }
 0xb6e   : > { %v3250_v56 = vmul.f32 %v3986_v51, %v2855_v48  ;;  %v4084_v57 = vpop.f32.mrb[23].mxu1 }
 0xb70   : > { %v3251_v58 = vpack.c.bf16 %v3250_v56, %v3250_v56 }
 0xb72   : > { %3990 = vmatmul.mubr.msk.bf16.vlgmr.msra.gmra.mrb[24].mxu0 %vm3258_vm7, %v3251_v58 }
 0xb73   : > { %4086 = vmatpush3.bf16.msra.mxu0 %v3313_v59  ;;  %4087 = vmatprep.mubr.msk.bf16.mxu0 %vm5247_vm3, %v5246_v61 }
 0xb7a   : > { %4088 = vmatmul.mubr.msk.bf16.vlgmr.msra.gmra.mrb[28].mxu0 %vm3258_vm7, %v3251_v58 }
 0xc45   : > { %v3302_v21 = vpop.f32.mrb[24].mxu0 }
 0xc46   : > { %v3309_v60 = vmul.f32 %v3302_v21, %v5989_v10  ;;  %v3304_v24 = vpop.f32.mrb[25].mxu0 }
 0xc47   : > { %v3310_v62 = vmul.f32 %v3304_v24, %v5991_v11  ;;  %v3306_v63 = vpop.f32.mrb[26].mxu0 }
 0xc48   : > { %v3307_v1 = vpop.f32.mrb[27].mxu0 }
 0xc49   : > { %v4001_v2 = vpack.c.bf16 %v3310_v62, %v3309_v60 }
 0xc4b   : > { %3365 = vst [vmem:[%s899_s29] sm:$0xff] %v4001_v2 }
 0xc4c   : > { %5109 = shalt.err (!%p5106_p11)
}
 0xc4d   : > { %s5110_s1 = scalar_lea.hbm %s6068_s26, 128  ;;  %s5114_s17 = scalar_lea.hbm %s6282_s8, 256 }
 0xc4e   : > { %p5111_p12 = scmp.ne.s32.totalorder %s6068_s26, %s5110_s1  ;;  %p5115_p3 = scmp.lt.u32.totalorder %s6068_s26, %s6282_s8 }
 0xc4f   : > { %p5116_p10 = scmp.lt.u32.totalorder %s5114_s17, %s5110_s1  ;;  %p5118_p6 = scmp.lt.u32.totalorder %s5110_s1, %s6068_s26 }
 0xc50   : > { %p5112_p1 = pnand %p5111_p12, %p6283_p13 }
 0xc51   : > { %p5117_p4 = por %p5116_p10, %p5115_p3 }
 0xc52   : > { %p5113_p2 = pneg %p5112_p1 }
 0xc53   : > { %p5119_p0 = por %p5118_p6, %p5117_p4 }
 0xc55   : > { %p5120_p5 = pnand %p5119_p0, %p5113_p2 }
 0xc57   : > { %5123 = shalt.err (!%p5120_p5)
}
 0xc58   : > { %4145 = dma.vmem_to_hbm [thread:$0]  (%p6283_p13), %s6070_s25, 128, %s6068_s26, %s3367_s5   ;;  %v3349_v61 = vpop.f32.mrb[28].mxu0 }
 0xc59   : > { %v3355_v3 = vmul.f32 %v3349_v61, %v6036_v35  ;;  %v4089_v4 = vpop.f32.mrb[29].mxu0  ;;  %s6284_s12 = sld [smem:[#allocation62_spill]]  ;;  %s3372_s25 = scalar_lea.sflag [#allocation28], %s5830_s13 }
 0xc5a   : > { %v3352_v5 = vpop.f32.mrb[30].mxu0  ;;  %s5124_s26 = scalar_lea.vmem %s6108_s19, 128  ;;  %s5250_s3 = smov [#allocation27]  }
 0xc5b   : > { %3356 = vst [vmem:[%s906_s21] sm:$0xff] %v3355_v3  ;;  %v4090_v6 = vpop.f32.mrb[31].mxu0  ;;  %p5125_p9 = scmp.ne.s32.totalorder %s6108_s19, %s5124_s26  ;;  %s5128_s5 = sshll.u32 %s5250_s3, 4  ;;  %s5129_s5 = int_to_ptr.vmem [resolvable:$false] %s5128_s5 }
 0xc5c   : > { %p5131_p11 = scmp.lt.s32.totalorder %s6108_s19, %s5129_s5 }
 0xc5d   : > { %p5126_p7 = pnand %p5125_p9, %p6283_p13 }
 0xc5f   : > { %s6105_s1 = scalar_lea.hbm %s6284_s12, %s4002_s6  ;;  %p5127_p8 = pneg %p5126_p7 }
 0xc60   : > { %s5130_s6 = scalar_lea.vmem %s5129_s5, 256 }
 0xc61   : > { %p5132_p12 = scmp.lt.s32.totalorder %s5130_s6, %s5124_s26 }
 0xc63   : > { %p5133_p1 = por %p5132_p12, %p5131_p11 }
 0xc65   : > { %p5134_p2 = pnand %p5133_p1, %p5127_p8 }
 0xc67   : > { %5137 = shalt.err (!%p5134_p2)
}
 0xc68   : > { %s5138_s13 = scalar_lea.hbm %s6105_s1, 128  ;;  %s5142_s10 = scalar_lea.hbm %s6284_s12, 256 }
 0xc69   : > { %p5139_p3 = scmp.ne.s32.totalorder %s6105_s1, %s5138_s13  ;;  %p5143_p6 = scmp.lt.u32.totalorder %s6105_s1, %s6284_s12 }
 0xc6a   : > { %p5144_p0 = scmp.lt.u32.totalorder %s5142_s10, %s5138_s13  ;;  %p5146_p9 = scmp.lt.u32.totalorder %s5138_s13, %s6105_s1 }
 0xc6b   : > { %p5140_p10 = pnand %p5139_p3, %p6283_p13 }
 0xc6c   : > { %p5145_p5 = por %p5144_p0, %p5143_p6 }
 0xc6d   : > { %p5141_p4 = pneg %p5140_p10 }
 0xc6e   : > { %p5147_p7 = por %p5146_p9, %p5145_p5 }
 0xc70   : > { %p5148_p8 = pnand %p5147_p7, %p5141_p4 }
 0xc72   : > { %5151 = shalt.err (!%p5148_p8)
}
 0xc73   : > { %4146 = dma.vmem_to_hbm [thread:$0]  (%p6283_p13), %s6108_s19, 128, %s6105_s1, %s3372_s25  }
 0xc74 PF: > { %s6285_s4 = sld [smem:[#allocation39_spill]]  ;;  %s6286_s18 = sld [smem:[#allocation44_spill]] }
 0xc75   : > { %p6288_p12 = scmp.ge.s32.totalorder %s5222_s24, 2 }
 0xc7a   : > { %s3411_s23 = sand.u32 1, %s6285_s4   ;;  %p6287_p11 = scmp.ne.s32.totalorder %s6286_s18, 0 }
 0xc7b   : > { %s3412_s14 = scalar_lea.sflag [#allocation4], %s3411_s23 }
 0xc7c   : > { %p4197_p1 = pnand %p6288_p12, %p6287_p11 }
 0xc7e   : > { %5201 = dma.done.wait (!%p4197_p1), %s3412_s14, 128  }
 0xc7f   : > { %5203 = vsyncadd (!%p4197_p1), %s3412_s14, 4294967168  ;;  %s3421_s26 = scalar_lea.sflag [#allocation28], %s3411_s23 }
 0xc80   : > { %5205 = dma.done.wait (!%p4197_p1), %s3421_s26, 128  }
 0xc81   : > { %5207 = vsyncadd (!%p4197_p1), %s3421_s26, 4294967168  ;;  %s6289_s24 = sld [smem:[#allocation42_spill]]  ;;  %s6290_s30 = sld [smem:[#allocation40_spill]] }
 0xc82   : > { %s6291_s23 = sld [smem:[#allocation43_spill]]  ;;  %s6292_s1 = smov %s5214_s22 }
 0xc87   : > { %p46_p13 = scmp.ge.s32.totalorder %s6289_s24, 4   ;;  %s6293_s22 = smov %s6290_s30 }
 0xc89   :  { %48 = sbr.rel (!%p46_p13) target bundleno = 34 (0x22), region = 241 }
 0xc90   :  { %3426 = vsyncpa [#allocation3], 1 }
 0xc91   :  { %3428 = vsyncpa [#allocation3 + $0x1], 1 }
 0xc92   :  { %3429 = vsyncpa [#allocation6], 1 }
 0xc93   :  { %3431 = vsyncpa [#allocation6 + $0x1], 1 }
 0xc94   :  { %3432 = vsyncpa [#allocation9], 1 }
 0xc95   :  { %3433 = vsyncpa [#allocation12], 1 }
 0xc96   :  { %3434 = vsyncpa [#allocation15], 1 }
 0xc97   :  { %3435 = vsyncpa [#allocation18], 1 }
 0xc98   :  { %3436 = vsyncpa [#allocation21], 1 }
 0xc99   :  { %3437 = vsyncpa [#allocation24], 1 }
 0xc9a   :  { %3438 = vsyncpa [#allocation4], 1 }
 0xc9b   :  { %3440 = vsyncpa [#allocation4 + $0x1], 1 }
 0xc9c   :  { %3441 = vsyncpa [#allocation28], 1 }
 0xc9d   :  { %3443 = vsyncpa [#allocation28 + $0x1], 1 }

</bundles_post_ra>
